<compile_context>
chip_gen: v5e
topology: v5e:2x2
jax: 0.10.0
libtpu: 0.0.40
codegen_flags: <defaults>
</compile_context>

<pallas_src>
import jax
import jax.numpy as jnp
from jax.experimental import pallas as pl
from jax.experimental.pallas import tpu as pltpu

D_U   = 8
D_FIG = 64
D_MID = 128
D_OUT = D_FIG * D_FIG      # 4096


def _net_kernel(fig_ref, wf1_ref, bf1_ref, wf2_ref, bf2_ref, out_ref):
    # Stage 1 (runs exactly once — no grid): h = relu(fig @ wf1 + bf1), (B, D_MID).
    # fig/wf1 arrive pre-cast to bf16; MXU accumulates in f32.
    h = (jnp.dot(fig_ref[...], wf1_ref[...], preferred_element_type=jnp.float32)
         + bf1_ref[...])
    h = jnp.maximum(h, 0.0).astype(jnp.bfloat16)
    # Stage 2: out = h @ wf2 + bf2.  wf2/bf2 already carry the module's final
    # "fig + fig" ×2 fold.  Output is lane-dense (last dim = 4096).
    out_ref[...] = (
        jnp.dot(h, wf2_ref[...], preferred_element_type=jnp.float32) + bf2_ref[...]
    )


def net_as_matrix(fig, u, prepped_params):
    """fig: (B, D_FIG) f32, u: (B, D_U) f32 (dead in the module output).
    Returns (B, D_FIG, D_FIG) f32."""
    del u  # computed-but-unused in the reference forward; removed as dead code
    wf1, bf1, wf2, bf2 = prepped_params
    B = fig.shape[0]
    figq = fig.astype(jnp.bfloat16)   # pre-cast: halves fig DMA, no in-kernel cast

    cost = pl.CostEstimate(
        flops=2 * B * D_FIG * D_MID + 2 * B * D_MID * D_OUT,
        transcendentals=0,
        bytes_accessed=(figq.size * figq.dtype.itemsize
                        + wf1.size * wf1.dtype.itemsize
                        + wf2.size * wf2.dtype.itemsize
                        + bf1.size * bf1.dtype.itemsize
                        + bf2.size * bf2.dtype.itemsize
                        + B * D_OUT * 4),
    )

    # No grid: every operand is a single whole-array VMEM-resident block.
    # Total footprint ~1.3 MiB (wf2 bf16 1 MiB + out f32 256 KiB + small rest),
    # far under the scoped VMEM limit on every generation (v5e/v6e/v7x).
    vmem_specs = pl.BlockSpec(memory_space=pltpu.MemorySpace.VMEM)
    out2d = pl.pallas_call(
        _net_kernel,
        out_shape=jax.ShapeDtypeStruct((B, D_OUT), jnp.float32),
        in_specs=[vmem_specs] * 5,
        out_specs=vmem_specs,
        compiler_params=pltpu.CompilerParams(vmem_limit_bytes=32 * 1024 * 1024),
        cost_estimate=cost,
    )(figq, wf1, bf1, wf2, bf2)
    return out2d.reshape(-1, D_FIG, D_FIG)


def init_params(key):
    """PyTorch-style uniform(-1/sqrt(fan_in)) init; W stored as (in, out), f32.
    Only the figure path is materialized (the action path is dead code)."""
    layer_dims = [
        (D_FIG, D_MID),   # figurelayer1
        (D_MID, D_OUT),   # figurelayer2 (spec's 327868 in_features treated as 32768 typo)
    ]
    params = []
    for din, dout in layer_dims:
        key, kw, kb = jax.random.split(key, 3)
        bound = 1.0 / (din ** 0.5)
        params.append(jax.random.uniform(kw, (din, dout), jnp.float32, -bound, bound))
        params.append(jax.random.uniform(kb, (1, dout), jnp.float32, -bound, bound))
    return tuple(params)   # (wf1, bf1, wf2, bf2)


def prepare_params(raw):
    """Kernel-side param prep: weights -> bf16 (halves the HBM weight stream),
    and the module's final `fig + fig` doubling folded into wf2/bf2.
    (Scaling by 2 is exact, and (2*W).astype(bf16) == 2*(W.astype(bf16)).)"""
    wf1, bf1, wf2, bf2 = raw
    return (wf1.astype(jnp.bfloat16),
            bf1,                                   # biases stay f32 (added post-accum)
            (2.0 * wf2).astype(jnp.bfloat16),
            2.0 * bf2)


def _reference_f32(fig, raw):
    """Pure-f32 module semantics (loose check: differs by bf16 weight quantization)."""
    wf1, bf1, wf2, bf2 = raw
    h = jnp.maximum(fig @ wf1 + bf1, 0.0)
    f = h @ wf2 + bf2
    return (f + f).reshape(-1, D_FIG, D_FIG)


def _reference_quantized(fig, raw):
    """Identical math to the kernel (bf16 operands, f32 accum, ×2 folded) — tight check."""
    wf1, bf1, wf2, bf2 = raw
    figq = fig.astype(jnp.bfloat16)
    h = jnp.dot(figq, wf1.astype(jnp.bfloat16), preferred_element_type=jnp.float32) + bf1
    h = jnp.maximum(h, 0.0).astype(jnp.bfloat16)
    f = (jnp.dot(h, (2.0 * wf2).astype(jnp.bfloat16), preferred_element_type=jnp.float32)
         + 2.0 * bf2)
    return f.reshape(-1, D_FIG, D_FIG)


if __name__ == "__main__":
    key = jax.random.PRNGKey(0)
    key, k_fig, k_u = jax.random.split(key, 3)
    B = 16  # sublane-aligned batch (review item 3): fills bf16 sublane-packed
            # vregs and gives unmasked output stores; the weight stream is the
            # same as B=2 so the extra rows are essentially free.
    fig = jax.random.normal(k_fig, (B, D_FIG), jnp.float32)
    u = jax.random.normal(k_u, (B, D_U), jnp.float32)   # dead in the module output

    raw = init_params(key)
    prepped = prepare_params(raw)

    out = net_as_matrix(fig, u, prepped)
    out = jax.block_until_ready(out)
    assert out.shape == (B, D_FIG, D_FIG)

    # Tight check vs a reference doing the identical bf16/f32-accum math.
    ref_q = _reference_quantized(fig, raw)
    assert jnp.allclose(out, ref_q, atol=1e-3, rtol=1e-3), "mismatch vs quantized reference"

    # Loose check vs the pure-f32 module semantics (bf16 quantization error only).
    ref_f = _reference_f32(fig, raw)
    assert jnp.allclose(out, ref_f, atol=5e-2, rtol=5e-2), "mismatch vs f32 reference"

    print("KERNEL_OK")
</pallas_src>

<mosaic_0001>
module attributes {stable_mosaic.version = 11 : i64} {
  func.func @_net_kernel(%arg0: memref<16x64xbf16, #tpu.memory_space<vmem>>, %arg1: memref<64x128xbf16, #tpu.memory_space<vmem>>, %arg2: memref<1x128xf32, #tpu.memory_space<vmem>>, %arg3: memref<128x4096xbf16, #tpu.memory_space<vmem>>, %arg4: memref<1x4096xf32, #tpu.memory_space<vmem>>, %arg5: memref<16x4096xf32, #tpu.memory_space<vmem>>) attributes {dimension_semantics = [], scalar_prefetch = 0 : i64, scratch_operands = 0 : i64, tpu.core_type = #tpu.core_type<tc>} {
    %c0 = arith.constant 0 : index
    %c0_0 = arith.constant 0 : index
    %0 = vector.load %arg0[%c0, %c0_0] : memref<16x64xbf16, #tpu.memory_space<vmem>>, vector<16x64xbf16>
    %c0_1 = arith.constant 0 : index
    %c0_2 = arith.constant 0 : index
    %1 = vector.load %arg1[%c0_1, %c0_2] : memref<64x128xbf16, #tpu.memory_space<vmem>>, vector<64x128xbf16>
    %cst = arith.constant dense<0.000000e+00> : vector<16x128xf32>
    %2 = tpu.matmul %0, %1, %cst {dimension_numbers = #tpu.dot_dimension_numbers<[1], [0], [0], [1], [0, 0, 1, 1], [], []>} : vector<16x64xbf16>, vector<64x128xbf16>, vector<16x128xf32> -> vector<16x128xf32>
    %c0_3 = arith.constant 0 : index
    %c0_4 = arith.constant 0 : index
    %3 = vector.load %arg2[%c0_3, %c0_4] : memref<1x128xf32, #tpu.memory_space<vmem>>, vector<1x128xf32>
    %4 = vector.broadcast %3 : vector<1x128xf32> to vector<16x128xf32>
    %5 = arith.addf %2, %4 : vector<16x128xf32>
    %cst_5 = arith.constant 0.000000e+00 : f32
    %6 = vector.broadcast %cst_5 : f32 to vector<16x128xf32>
    %7 = arith.maximumf %5, %6 : vector<16x128xf32>
    %8 = arith.truncf %7 : vector<16x128xf32> to vector<16x128xbf16>
    %c0_6 = arith.constant 0 : index
    %c0_7 = arith.constant 0 : index
    %9 = vector.load %arg3[%c0_6, %c0_7] : memref<128x4096xbf16, #tpu.memory_space<vmem>>, vector<128x4096xbf16>
    %cst_8 = arith.constant dense<0.000000e+00> : vector<16x4096xf32>
    %10 = tpu.matmul %8, %9, %cst_8 {dimension_numbers = #tpu.dot_dimension_numbers<[1], [0], [0], [1], [0, 0, 1, 1], [], []>} : vector<16x128xbf16>, vector<128x4096xbf16>, vector<16x4096xf32> -> vector<16x4096xf32>
    %c0_9 = arith.constant 0 : index
    %c0_10 = arith.constant 0 : index
    %11 = vector.load %arg4[%c0_9, %c0_10] : memref<1x4096xf32, #tpu.memory_space<vmem>>, vector<1x4096xf32>
    %12 = vector.broadcast %11 : vector<1x4096xf32> to vector<16x4096xf32>
    %13 = arith.addf %10, %12 : vector<16x4096xf32>
    %c0_11 = arith.constant 0 : index
    %c0_12 = arith.constant 0 : index
    %14 = vector.load %arg5[%c0_11, %c0_12] : memref<16x4096xf32, #tpu.memory_space<vmem>>, vector<16x4096xf32>
    tpu.vector_store %arg5[%c0_11, %c0_12], %13 {strides = array<i32>} : memref<16x4096xf32, #tpu.memory_space<vmem>>, vector<16x4096xf32>,
    return
  }
}

</mosaic_0001>

<bundles_post_ra>
// kernel: tpu_custom_call.1
= control target key start
LH: loop header
LB: loop body
LE: loop exit
PB: predicated region body
PF: predicated region fallthrough
CT: control target
= control target key end

     0   :  { %10 = vsyncpa [#allocation3], 0  ;;  %s3892_s0 = inlined_call_operand.hbm [shape: bf16[16,64], index: 0, kind: input, shape index: {}]   ;;  %s3893_s1 = inlined_call_operand.hbm [shape: bf16[64,128], index: 1, kind: input, shape index: {}]   ;;  %s3894_s2 = inlined_call_operand.vmem [shape: f32[1,128], index: 2, kind: input, shape index: {}]   ;;  %s3895_s3 = inlined_call_operand.hbm [shape: bf16[128,4096], index: 3, kind: input, shape index: {}]   ;;  %s3896_s4 = inlined_call_operand.hbm [shape: f32[1,4096], index: 4, kind: input, shape index: {}]   ;;  %s3897_s5 = inlined_call_operand.hbm [shape: f32[16,4096], index: 5, kind: output, shape index: {}]  }
   0x1   :  { %11 = vsyncpa [#allocation6], 0 }
   0x2   :  { %12 = vsyncpa [#allocation9], 0 }
   0x3   :  { %13 = vsyncpa [#allocation4], 0  ;;  %s31_s20 = sshll.u32 %s3893_s1, 4  ;;  %s3734_s21 = smov [#allocation5]   ;;  %s32_s20 = int_to_ptr.hbm [resolvable:$true] %s31_s20 }
   0x4   :  { %s33_s22 = sshll.u32 %s3734_s21, 4  ;;  %s18_s25 = sshll.u32 %s3892_s0, 4  ;;  %s34_s22 = int_to_ptr.vmem [resolvable:$true] %s33_s22  ;;  %s19_s25 = int_to_ptr.hbm [resolvable:$true] %s18_s25 }
   0x5   :  { %s3735_s26 = smov 64   ;;  %s3736_s27 = smov 4  }
   0x6   :  { %39 = dma.hbm_to_vmem [thread:$0]  %s32_s20, 512, %s34_s22, [#allocation6], %s3735_s26, %s3735_s26, %s3736_s27  }
   0x7   :  { %s3737_s28 = smov [#allocation2]   ;;  %s46_s7 = sshll.u32 %s3895_s3, 4  ;;  %s47_s7 = int_to_ptr.hbm [resolvable:$true] %s46_s7 }
   0x8   :  { %s20_s29 = sshll.u32 %s3737_s28, 4  ;;  %s3738_s1 = smov [#allocation7]   ;;  %s21_s29 = int_to_ptr.vmem [resolvable:$true] %s20_s29 }
   0x9   :  { %26 = dma.hbm_to_vmem [thread:$0]  %s19_s25, 128, %s21_s29, [#allocation3], %s3735_s26, %s3735_s26, %s3736_s27  }
   0xa   :  { %s48_s8 = sshll.u32 %s3738_s1, 4  ;;  %s60_s0 = sshll.u32 %s3896_s4, 4  ;;  %s49_s8 = int_to_ptr.vmem [resolvable:$true] %s48_s8  ;;  %s61_s0 = int_to_ptr.hbm [resolvable:$true] %s60_s0 }
   0xb   :  { %s3739_s11 = smov 2048   ;;  %s3740_s12 = smov 128  }
   0xc   :  { %54 = dma.hbm_to_vmem [thread:$0]  %s47_s7, 32768, %s49_s8, [#allocation6], %s3739_s11, %s3739_s11, %s3740_s12  }
   0xd   :  { %s3741_s13 = smov [#allocation8]  }
   0xe   :  { %s62_s14 = sshll.u32 %s3741_s13, 4  ;;  %s63_s14 = int_to_ptr.vmem [resolvable:$true] %s62_s14 }
   0xf   :  { %65 = dma.hbm_to_vmem [thread:$0]  %s61_s0, 512, %s63_s14, [#allocation9]  }
  0x10   :  { %3726 = dma.done.wait [#allocation3], 128  }
  0x11   :  { %3727 = vsyncadd [#allocation3], 4294967168 }
  0x12   :  { %3728 = dma.done.wait [#allocation6], 33280  }
  0x13   :  { %3729 = vsyncadd [#allocation6], 4294934016 }
  0x14   :  { %3730 = dma.done.wait [#allocation9], 512  }
  0x15   :  { %3731 = vsyncadd [#allocation9], 4294966784  ;;  %v3337_v0 = vld [vmem:[#allocation5 + $0x18] sm:$0xff]  ;;  %v3336_v1 = vld [vmem:[#allocation5 + $0x10] sm:$0xff]  ;;  %vm126_vm0 = vcmask 523264   ;;  %s2273_s18 = sshll.u32 %s3897_s5, 4  ;;  %s2274_s18 = int_to_ptr.hbm [resolvable:$true] %s2273_s18 }
  0x16   :  { %v3207_v2 = vld [vmem:[#allocation7 + $0x700] sm:$0xf]  ;;  %134 = vmatpush.bf16.msra.mxu0 %v3337_v0  ;;  %v3562_v4 = vld [vmem:[#allocation7 + $0x704] sm:$0xf]  ;;  %v3215_v8 = vld [vmem:[#allocation7 + $0x708] sm:$0xf] }
  0x17   :  { %v3578_v3 = vld [vmem:[#allocation7 + $0x77c] sm:$0xf0]  ;;  %v3209_v5 = vld [vmem:[#allocation7 + $0x780] sm:$0xf0]  ;;  %v3579_v9 = vld [vmem:[#allocation7 + $0x784] sm:$0xf0] }
  0x18   :  { %v3208_v6 = vor.u32 %v3578_v3, %v3207_v2  ;;  %v3212_v7 = vor.u32 %v3562_v4, %v3209_v5  ;;  %v3335_v10 = vld [vmem:[#allocation5 + $0x8] sm:$0xff]  ;;  %v3216_v11 = vor.u32 %v3579_v9, %v3215_v8  ;;  %v3079_v12 = vld [vmem:[#allocation7 + $0x600] sm:$0xf]  ;;  %v3530_v15 = vld [vmem:[#allocation7 + $0x604] sm:$0xf]  ;;  %s3743_s19 = smov 4096  }
  0x19   :  { %v3546_v13 = vld [vmem:[#allocation7 + $0x67c] sm:$0xf0]  ;;  %v3081_v16 = vld [vmem:[#allocation7 + $0x680] sm:$0xf0]  ;;  %v3087_v17 = vld [vmem:[#allocation7 + $0x608] sm:$0xf] }
  0x1a   :  { %1755 = vmatpush.bf16.msra.mxu1 %v3208_v6  ;;  %1769 = vmatpush.bf16.msra.mxu2 %v3212_v7  ;;  %v3080_v14 = vor.u32 %v3546_v13, %v3079_v12  ;;  %v3563_v18 = vld [vmem:[#allocation7 + $0x70c] sm:$0xf]  ;;  %v3084_v20 = vor.u32 %v3530_v15, %v3081_v16  ;;  %v3547_v21 = vld [vmem:[#allocation7 + $0x684] sm:$0xf0]  ;;  %v2951_v23 = vld [vmem:[#allocation7 + $0x500] sm:$0xf] }
  0x1b   :  { %135 = vmatpush.bf16.msra.mxu0 %v3336_v1  ;;  %1783 = vmatpush.bf16.msra.mxu3 %v3216_v11  ;;  %v3217_v19 = vld [vmem:[#allocation7 + $0x788] sm:$0xf0]  ;;  %v3088_v22 = vor.u32 %v3547_v21, %v3087_v17  ;;  %v3514_v24 = vld [vmem:[#allocation7 + $0x57c] sm:$0xf0]  ;;  %v3498_v25 = vld [vmem:[#allocation7 + $0x504] sm:$0xf] }
  0x1c   :  { %v2953_v26 = vld [vmem:[#allocation7 + $0x580] sm:$0xf0]  ;;  %v2959_v27 = vld [vmem:[#allocation7 + $0x508] sm:$0xf]  ;;  %v2952_v30 = vor.u32 %v3514_v24, %v2951_v23  ;;  %v2823_v33 = vld [vmem:[#allocation7 + $0x400] sm:$0xf]  ;;  %v3220_v36 = vor.u32 %v3563_v18, %v3217_v19 }
  0x1d   :  { %v3515_v28 = vld [vmem:[#allocation7 + $0x584] sm:$0xf0]  ;;  %v3334_v29 = vld [vmem:[#allocation5] sm:$0xff]  ;;  %v2956_v31 = vor.u32 %v3498_v25, %v2953_v26  ;;  %v3531_v40 = vld [vmem:[#allocation7 + $0x60c] sm:$0xf]  ;;  %s3744_s20 = smov 256  }
  0x1e   :  { %1756 = vmatpush.bf16.msra.mxu1 %v3080_v14  ;;  %1770 = vmatpush.bf16.msra.mxu2 %v3084_v20  ;;  %v2960_v32 = vor.u32 %v3515_v28, %v2959_v27  ;;  %v3482_v34 = vld [vmem:[#allocation7 + $0x47c] sm:$0xf0]  ;;  %v3466_v35 = vld [vmem:[#allocation7 + $0x404] sm:$0xf]  ;;  %v2831_v38 = vld [vmem:[#allocation7 + $0x408] sm:$0xf] }
  0x1f   :  { %136 = vmatpush.bf16.msra.mxu0 %v3335_v10  ;;  %1784 = vmatpush.bf16.msra.mxu3 %v3088_v22  ;;  %v2825_v37 = vld [vmem:[#allocation7 + $0x480] sm:$0xf0]  ;;  %v3483_v39 = vld [vmem:[#allocation7 + $0x484] sm:$0xf0]  ;;  %v3089_v41 = vld [vmem:[#allocation7 + $0x688] sm:$0xf0]  ;;  %v2824_v43 = vor.u32 %v3482_v34, %v2823_v33 }
  0x20   :  { %v3333_v42 = vld [vmem:[#allocation2] sm:$0xff]  ;;  %v2828_v44 = vor.u32 %v3466_v35, %v2825_v37  ;;  %v2832_v45 = vor.u32 %v3483_v39, %v2831_v38  ;;  %v2695_v46 = vld [vmem:[#allocation7 + $0x300] sm:$0xf]  ;;  %v3434_v48 = vld [vmem:[#allocation7 + $0x304] sm:$0xf]  ;;  %v3092_v49 = vor.u32 %v3531_v40, %v3089_v41 }
  0x21   :  { %v3450_v47 = vld [vmem:[#allocation7 + $0x37c] sm:$0xf0]  ;;  %v2697_v50 = vld [vmem:[#allocation7 + $0x380] sm:$0xf0]  ;;  %v2703_v51 = vld [vmem:[#allocation7 + $0x308] sm:$0xf] }
  0x22   :  { %1757 = vmatpush.bf16.msra.mxu1 %v2952_v30  ;;  %1771 = vmatpush.bf16.msra.mxu2 %v2956_v31  ;;  %v3451_v52 = vld [vmem:[#allocation7 + $0x384] sm:$0xf0]  ;;  %v3499_v53 = vld [vmem:[#allocation7 + $0x50c] sm:$0xf]  ;;  %v2696_v55 = vor.u32 %v3450_v47, %v2695_v46  ;;  %v2700_v56 = vor.u32 %v3434_v48, %v2697_v50  ;;  %v2567_v58 = vld [vmem:[#allocation7 + $0x200] sm:$0xf] }
  0x23   :  { %137 = vmatpush.bf16.msra.mxu0 %v3334_v29  ;;  %1785 = vmatpush.bf16.msra.mxu3 %v2960_v32  ;;  %v2961_v54 = vld [vmem:[#allocation7 + $0x588] sm:$0xf0]  ;;  %v2704_v57 = vor.u32 %v3451_v52, %v2703_v51  ;;  %v3418_v59 = vld [vmem:[#allocation7 + $0x27c] sm:$0xf0]  ;;  %v3402_v60 = vld [vmem:[#allocation7 + $0x204] sm:$0xf] }
  0x24   :  { %v2964_v61 = vor.u32 %v3499_v53, %v2961_v54  ;;  %v2569_v62 = vld [vmem:[#allocation7 + $0x280] sm:$0xf0]  ;;  %v2575_v63 = vld [vmem:[#allocation7 + $0x208] sm:$0xf]  ;;  %v3467_v1 = vld [vmem:[#allocation7 + $0x40c] sm:$0xf]  ;;  %v2568_v3 = vor.u32 %v3418_v59, %v2567_v58 }
  0x25   :  { %v3419_v0 = vld [vmem:[#allocation7 + $0x284] sm:$0xf0]  ;;  %v2833_v2 = vld [vmem:[#allocation7 + $0x488] sm:$0xf0]  ;;  %v2572_v4 = vor.u32 %v3402_v60, %v2569_v62  ;;  %v2439_v6 = vld [vmem:[#allocation7 + $0x100] sm:$0xf] }
  0x26   :  { %2308 = vmatmul.msk.bf16.vlgmr.msra.gmra.mxu0 %vm126_vm0, %v3333_v42  ;;  %1758 = vmatpush.bf16.msra.mxu1 %v2824_v43  ;;  %v2576_v5 = vor.u32 %v3419_v0, %v2575_v63  ;;  %v3386_v7 = vld [vmem:[#allocation7 + $0x17c] sm:$0xf0]  ;;  %v3370_v8 = vld [vmem:[#allocation7 + $0x104] sm:$0xf]  ;;  %v2836_v9 = vor.u32 %v3467_v1, %v2833_v2  ;;  %v2447_v11 = vld [vmem:[#allocation7 + $0x108] sm:$0xf] }
  0x27   :  { %1797 = vmatpush.bf16.msrb.mxu0 %v3220_v36  ;;  %1772 = vmatpush.bf16.msra.mxu2 %v2828_v44  ;;  %v2441_v10 = vld [vmem:[#allocation7 + $0x180] sm:$0xf0]  ;;  %v3387_v12 = vld [vmem:[#allocation7 + $0x184] sm:$0xf0]  ;;  %v3435_v13 = vld [vmem:[#allocation7 + $0x30c] sm:$0xf]  ;;  %v2440_v15 = vor.u32 %v3386_v7, %v2439_v6 }
  0x28   :  { %1786 = vmatpush.bf16.msra.mxu3 %v2832_v45  ;;  %v2705_v14 = vld [vmem:[#allocation7 + $0x388] sm:$0xf0]  ;;  %v2444_v18 = vor.u32 %v3370_v8, %v2441_v10  ;;  %v2448_v19 = vor.u32 %v3387_v12, %v2447_v11  ;;  %v2311_v20 = vld [vmem:[#allocation7] sm:$0xf]  ;;  %v3338_v22 = vld [vmem:[#allocation7 + $0x4] sm:$0xf] }
  0x29   :  { %v3403_v16 = vld [vmem:[#allocation7 + $0x20c] sm:$0xf]  ;;  %v3354_v21 = vld [vmem:[#allocation7 + $0x7c] sm:$0xf0]  ;;  %v2708_v23 = vor.u32 %v3435_v13, %v2705_v14  ;;  %v2313_v24 = vld [vmem:[#allocation7 + $0x80] sm:$0xf0] }
  0x2a   :  { %1759 = vmatpush.bf16.msra.mxu1 %v2696_v55  ;;  %v2577_v17 = vld [vmem:[#allocation7 + $0x288] sm:$0xf0]  ;;  %v2319_v25 = vld [vmem:[#allocation7 + $0x8] sm:$0xf]  ;;  %v3223_v27 = vld [vmem:[#allocation7 + $0x710] sm:$0xf]  ;;  %v2312_v30 = vor.u32 %v3354_v21, %v2311_v20  ;;  %v2316_v34 = vor.u32 %v3338_v22, %v2313_v24 }
  0x2b   :  { %1798 = vmatpush.bf16.msrb.mxu0 %v3092_v49  ;;  %1773 = vmatpush.bf16.msra.mxu2 %v2700_v56  ;;  %v3355_v26 = vld [vmem:[#allocation7 + $0x84] sm:$0xf0]  ;;  %v3580_v28 = vld [vmem:[#allocation7 + $0x78c] sm:$0xf0]  ;;  %v3564_v29 = vld [vmem:[#allocation7 + $0x714] sm:$0xf]  ;;  %v2580_v36 = vor.u32 %v3403_v16, %v2577_v17 }
  0x2c   :  { %1787 = vmatpush.bf16.msra.mxu3 %v2704_v57  ;;  %v3225_v31 = vld [vmem:[#allocation7 + $0x790] sm:$0xf0]  ;;  %v3231_v32 = vld [vmem:[#allocation7 + $0x718] sm:$0xf]  ;;  %v2320_v35 = vor.u32 %v3355_v26, %v2319_v25  ;;  %v3371_v37 = vld [vmem:[#allocation7 + $0x10c] sm:$0xf]  ;;  %v3224_v39 = vor.u32 %v3580_v28, %v3223_v27 }
  0x2d   :  { %v3581_v33 = vld [vmem:[#allocation7 + $0x794] sm:$0xf0]  ;;  %v2449_v38 = vld [vmem:[#allocation7 + $0x188] sm:$0xf0]  ;;  %v3095_v40 = vld [vmem:[#allocation7 + $0x610] sm:$0xf]  ;;  %v3228_v41 = vor.u32 %v3564_v29, %v3225_v31 }
  0x2e   :  { %1760 = vmatpush.bf16.msra.mxu1 %v2568_v3  ;;  %v3232_v42 = vor.u32 %v3581_v33, %v3231_v32  ;;  %v3548_v43 = vld [vmem:[#allocation7 + $0x68c] sm:$0xf0]  ;;  %v3532_v44 = vld [vmem:[#allocation7 + $0x614] sm:$0xf]  ;;  %v3103_v46 = vld [vmem:[#allocation7 + $0x618] sm:$0xf]  ;;  %v2452_v48 = vor.u32 %v3371_v37, %v2449_v38 }
  0x2f   :  { %1799 = vmatpush.bf16.msrb.mxu0 %v2964_v61  ;;  %1774 = vmatpush.bf16.msra.mxu2 %v2572_v4  ;;  %v3097_v45 = vld [vmem:[#allocation7 + $0x690] sm:$0xf0]  ;;  %v3549_v47 = vld [vmem:[#allocation7 + $0x694] sm:$0xf0]  ;;  %v3339_v49 = vld [vmem:[#allocation7 + $0xc] sm:$0xf]  ;;  %v3096_v51 = vor.u32 %v3548_v43, %v3095_v40 }
  0x30   :  { %1788 = vmatpush.bf16.msra.mxu3 %v2576_v5  ;;  %v2321_v50 = vld [vmem:[#allocation7 + $0x88] sm:$0xf0]  ;;  %v3565_v52 = vld [vmem:[#allocation7 + $0x71c] sm:$0xf]  ;;  %v3100_v53 = vor.u32 %v3532_v44, %v3097_v45  ;;  %v3104_v54 = vor.u32 %v3549_v47, %v3103_v46  ;;  %v2967_v55 = vld [vmem:[#allocation7 + $0x510] sm:$0xf] }
  0x31   :  { %v3516_v56 = vld [vmem:[#allocation7 + $0x58c] sm:$0xf0]  ;;  %v3233_v57 = vld [vmem:[#allocation7 + $0x798] sm:$0xf0]  ;;  %v3500_v58 = vld [vmem:[#allocation7 + $0x514] sm:$0xf]  ;;  %v2324_v62 = vor.u32 %v3339_v49, %v2321_v50 }
  0x32   :  { %1761 = vmatpush.bf16.msra.mxu1 %v2440_v15  ;;  %v2969_v59 = vld [vmem:[#allocation7 + $0x590] sm:$0xf0]  ;;  %v2975_v60 = vld [vmem:[#allocation7 + $0x518] sm:$0xf]  ;;  %v2968_v63 = vor.u32 %v3516_v56, %v2967_v55  ;;  %v3236_v0 = vor.u32 %v3565_v52, %v3233_v57  ;;  %v3533_v1 = vld [vmem:[#allocation7 + $0x61c] sm:$0xf] }
  0x33   :  { %1800 = vmatpush.bf16.msrb.mxu0 %v2836_v9  ;;  %1775 = vmatpush.bf16.msra.mxu2 %v2444_v18  ;;  %v3517_v61 = vld [vmem:[#allocation7 + $0x594] sm:$0xf0]  ;;  %v2972_v2 = vor.u32 %v3500_v58, %v2969_v59  ;;  %v2839_v3 = vld [vmem:[#allocation7 + $0x410] sm:$0xf]  ;;  %v3105_v5 = vld [vmem:[#allocation7 + $0x698] sm:$0xf0] }
  0x34   :  { %1789 = vmatpush.bf16.msra.mxu3 %v2448_v19  ;;  %v3484_v4 = vld [vmem:[#allocation7 + $0x48c] sm:$0xf0]  ;;  %v2976_v6 = vor.u32 %v3517_v61, %v2975_v60  ;;  %v3468_v7 = vld [vmem:[#allocation7 + $0x414] sm:$0xf]  ;;  %v2847_v9 = vld [vmem:[#allocation7 + $0x418] sm:$0xf]  ;;  %v3108_v12 = vor.u32 %v3533_v1, %v3105_v5 }
  0x35   :  { %v2841_v8 = vld [vmem:[#allocation7 + $0x490] sm:$0xf0]  ;;  %v3485_v10 = vld [vmem:[#allocation7 + $0x494] sm:$0xf0]  ;;  %v2840_v11 = vor.u32 %v3484_v4, %v2839_v3  ;;  %v3501_v14 = vld [vmem:[#allocation7 + $0x51c] sm:$0xf] }
  0x36   :  { %1762 = vmatpush.bf16.msra.mxu1 %v2312_v30  ;;  %v2844_v13 = vor.u32 %v3468_v7, %v2841_v8  ;;  %v2977_v15 = vld [vmem:[#allocation7 + $0x598] sm:$0xf0]  ;;  %v2848_v16 = vor.u32 %v3485_v10, %v2847_v9  ;;  %v2711_v21 = vld [vmem:[#allocation7 + $0x310] sm:$0xf]  ;;  %v2713_v25 = vld [vmem:[#allocation7 + $0x390] sm:$0xf0] }
  0x37   :  { %1801 = vmatpush.bf16.msrb.mxu0 %v2708_v23  ;;  %1776 = vmatpush.bf16.msra.mxu2 %v2316_v34  ;;  %v2980_v17 = vor.u32 %v3501_v14, %v2977_v15  ;;  %v3469_v18 = vld [vmem:[#allocation7 + $0x41c] sm:$0xf]  ;;  %v3452_v22 = vld [vmem:[#allocation7 + $0x38c] sm:$0xf0]  ;;  %v3436_v23 = vld [vmem:[#allocation7 + $0x314] sm:$0xf] }
  0x38   :  { %1790 = vmatpush.bf16.msra.mxu3 %v2320_v35  ;;  %v2849_v19 = vld [vmem:[#allocation7 + $0x498] sm:$0xf0]  ;;  %v2712_v24 = vor.u32 %v3452_v22, %v2711_v21  ;;  %v2719_v26 = vld [vmem:[#allocation7 + $0x318] sm:$0xf]  ;;  %v2716_v28 = vor.u32 %v3436_v23, %v2713_v25  ;;  %v2583_v33 = vld [vmem:[#allocation7 + $0x210] sm:$0xf] }
  0x39   :  { %v2852_v20 = vor.u32 %v3469_v18, %v2849_v19  ;;  %v3453_v27 = vld [vmem:[#allocation7 + $0x394] sm:$0xf0]  ;;  %v3437_v30 = vld [vmem:[#allocation7 + $0x31c] sm:$0xf]  ;;  %v3420_v34 = vld [vmem:[#allocation7 + $0x28c] sm:$0xf0] }
  0x3a   :  { %1811 = vmatpush.bf16.msrb.mxu1 %v3224_v39  ;;  %v2720_v29 = vor.u32 %v3453_v27, %v2719_v26  ;;  %v2721_v31 = vld [vmem:[#allocation7 + $0x398] sm:$0xf0]  ;;  %v3404_v35 = vld [vmem:[#allocation7 + $0x214] sm:$0xf]  ;;  %v2591_v38 = vld [vmem:[#allocation7 + $0x218] sm:$0xf] }
  0x3b   :  { %1802 = vmatpush.bf16.msrb.mxu0 %v2580_v36  ;;  %1825 = vmatpush.bf16.msrb.mxu2 %v3228_v41  ;;  %v2724_v32 = vor.u32 %v3437_v30, %v2721_v31  ;;  %v2584_v36 = vor.u32 %v3420_v34, %v2583_v33  ;;  %v2585_v37 = vld [vmem:[#allocation7 + $0x290] sm:$0xf0]  ;;  %v3421_v39 = vld [vmem:[#allocation7 + $0x294] sm:$0xf0]  ;;  %v2593_v43 = vld [vmem:[#allocation7 + $0x298] sm:$0xf0] }
  0x3c   :  { %1839 = vmatpush.bf16.msrb.mxu3 %v3232_v42  ;;  %v2588_v40 = vor.u32 %v3404_v35, %v2585_v37  ;;  %v2592_v41 = vor.u32 %v3421_v39, %v2591_v38  ;;  %v3405_v42 = vld [vmem:[#allocation7 + $0x21c] sm:$0xf]  ;;  %v2455_v45 = vld [vmem:[#allocation7 + $0x110] sm:$0xf]  ;;  %v3372_v47 = vld [vmem:[#allocation7 + $0x114] sm:$0xf] }
  0x3d   :  { %v2596_v44 = vor.u32 %v3405_v42, %v2593_v43  ;;  %v3388_v46 = vld [vmem:[#allocation7 + $0x18c] sm:$0xf0]  ;;  %v2457_v49 = vld [vmem:[#allocation7 + $0x190] sm:$0xf0]  ;;  %v2463_v50 = vld [vmem:[#allocation7 + $0x118] sm:$0xf] }
  0x3e   :  { %1812 = vmatpush.bf16.msrb.mxu1 %v3096_v51  ;;  %v3389_v51 = vld [vmem:[#allocation7 + $0x194] sm:$0xf0]  ;;  %v2460_v52 = vor.u32 %v3372_v47, %v2457_v49  ;;  %v2465_v55 = vld [vmem:[#allocation7 + $0x198] sm:$0xf0]  ;;  %v2327_v57 = vld [vmem:[#allocation7 + $0x10] sm:$0xf] }
  0x3f   :  { %1803 = vmatpush.bf16.msrb.mxu0 %v2452_v48  ;;  %1826 = vmatpush.bf16.msrb.mxu2 %v3100_v53  ;;  %v2456_v48 = vor.u32 %v3388_v46, %v2455_v45  ;;  %v2464_v53 = vor.u32 %v3389_v51, %v2463_v50  ;;  %v3356_v58 = vld [vmem:[#allocation7 + $0x8c] sm:$0xf0]  ;;  %v3340_v59 = vld [vmem:[#allocation7 + $0x14] sm:$0xf]  ;;  %v2337_v3 = vld [vmem:[#allocation7 + $0x98] sm:$0xf0] }
  0x40   :  { %1840 = vmatpush.bf16.msrb.mxu3 %v3104_v54  ;;  %v3373_v54 = vld [vmem:[#allocation7 + $0x11c] sm:$0xf]  ;;  %v2328_v60 = vor.u32 %v3356_v58, %v2327_v57  ;;  %v2329_v61 = vld [vmem:[#allocation7 + $0x90] sm:$0xf0]  ;;  %v3239_v10 = vld [vmem:[#allocation7 + $0x720] sm:$0xf] }
  0x41   :  { %v2468_v56 = vor.u32 %v3373_v54, %v2465_v55  ;;  %v3247_v14 = vld [vmem:[#allocation7 + $0x728] sm:$0xf]  ;;  %v3567_v18 = vld [vmem:[#allocation7 + $0x72c] sm:$0xf]  ;;  %v3111_v23 = vld [vmem:[#allocation7 + $0x620] sm:$0xf] }
  0x42   :  { %1813 = vmatpush.bf16.msrb.mxu1 %v2968_v63  ;;  %v3357_v63 = vld [vmem:[#allocation7 + $0x94] sm:$0xf0]  ;;  %v3583_v15 = vld [vmem:[#allocation7 + $0x7a4] sm:$0xf0]  ;;  %v3249_v19 = vld [vmem:[#allocation7 + $0x7a8] sm:$0xf0] }
  0x43   :  { %1804 = vmatpush.bf16.msrb.mxu0 %v2324_v62  ;;  %1827 = vmatpush.bf16.msrb.mxu2 %v2972_v2  ;;  %v2335_v62 = vld [vmem:[#allocation7 + $0x18] sm:$0xf]  ;;  %v3341_v2 = vld [vmem:[#allocation7 + $0x1c] sm:$0xf]  ;;  %v3248_v25 = vor.u32 %v3583_v15, %v3247_v14  ;;  %v3252_v26 = vor.u32 %v3567_v18, %v3249_v19  ;;  %v3534_v27 = vld [vmem:[#allocation7 + $0x624] sm:$0xf] }
  0x44   :  { %1841 = vmatpush.bf16.msrb.mxu3 %v2976_v6  ;;  %v2336_v1 = vor.u32 %v3357_v63, %v2335_v62  ;;  %v2340_v4 = vor.u32 %v3341_v2, %v2337_v3  ;;  %v3605_v6 = vld [vmem:[%s3894_s2] ss:$0 sm:$0xff]  ;;  %v3551_v30 = vld [vmem:[#allocation7 + $0x6a4] sm:$0xf0]  ;;  %v3535_v31 = vld [vmem:[#allocation7 + $0x62c] sm:$0xf] }
  0x45   :  { %v2983_v35 = vld [vmem:[#allocation7 + $0x520] sm:$0xf]  ;;  %v3502_v39 = vld [vmem:[#allocation7 + $0x524] sm:$0xf]  ;;  %v3519_v42 = vld [vmem:[#allocation7 + $0x5a4] sm:$0xf0] }
  0x46   :  { %1814 = vmatpush.bf16.msrb.mxu1 %v2840_v11  ;;  %v3582_v11 = vld [vmem:[#allocation7 + $0x79c] sm:$0xf0]  ;;  %v3503_v43 = vld [vmem:[#allocation7 + $0x52c] sm:$0xf]  ;;  %v3470_v51 = vld [vmem:[#allocation7 + $0x424] sm:$0xf] }
  0x47   :  { %1853 = vmatpush.bf16.msra.mxu0 %v3236_v0  ;;  %1828 = vmatpush.bf16.msrb.mxu2 %v2844_v13  ;;  %v2332_v0 = vor.u32 %v3340_v59, %v2329_v61  ;;  %v3241_v13 = vld [vmem:[#allocation7 + $0x7a0] sm:$0xf0]  ;;  %v3240_v21 = vor.u32 %v3582_v11, %v3239_v10  ;;  %v2855_v47 = vld [vmem:[#allocation7 + $0x420] sm:$0xf]  ;;  %v3487_v54 = vld [vmem:[#allocation7 + $0x4a4] sm:$0xf0] }
  0x48   :  { %1842 = vmatpush.bf16.msrb.mxu3 %v2848_v16  ;;  %v3471_v55 = vld [vmem:[#allocation7 + $0x42c] sm:$0xf]  ;;  %v2727_v59 = vld [vmem:[#allocation7 + $0x320] sm:$0xf]  ;;  %v3438_v63 = vld [vmem:[#allocation7 + $0x324] sm:$0xf] }
  0x49   :  { %v3455_v2 = vld [vmem:[#allocation7 + $0x3a4] sm:$0xf0]  ;;  %v3439_v3 = vld [vmem:[#allocation7 + $0x32c] sm:$0xf]  ;;  %v3406_v11 = vld [vmem:[#allocation7 + $0x224] sm:$0xf] }
  0x4a   :  { %1815 = vmatpush.bf16.msrb.mxu1 %v2712_v24  ;;  %v3550_v24 = vld [vmem:[#allocation7 + $0x69c] sm:$0xf0]  ;;  %v3423_v14 = vld [vmem:[#allocation7 + $0x2a4] sm:$0xf0]  ;;  %v3407_v15 = vld [vmem:[#allocation7 + $0x22c] sm:$0xf] }
  0x4b   :  { %1854 = vmatpush.bf16.msra.mxu0 %v3108_v12  ;;  %1829 = vmatpush.bf16.msrb.mxu2 %v2716_v28  ;;  %v3566_v12 = vld [vmem:[#allocation7 + $0x724] sm:$0xf]  ;;  %v3112_v33 = vor.u32 %v3550_v24, %v3111_v23  ;;  %v2471_v19 = vld [vmem:[#allocation7 + $0x120] sm:$0xf]  ;;  %s3742_s2 = smov [#allocation10]  }
  0x4c   :  { %1843 = vmatpush.bf16.msrb.mxu3 %v2720_v29  ;;  %v3244_v22 = vor.u32 %v3566_v12, %v3241_v13  ;;  %v3113_v28 = vld [vmem:[#allocation7 + $0x6a0] sm:$0xf0]  ;;  %v3119_v29 = vld [vmem:[#allocation7 + $0x628] sm:$0xf]  ;;  %s2271_s15 = sshll.u32 %s3742_s2, 4  ;;  %s2272_s15 = int_to_ptr.vmem [resolvable:$true] %s2271_s15 }
  0x4d   :  { %v3116_v34 = vor.u32 %v3534_v27, %v3113_v28  ;;  %v3120_v37 = vor.u32 %v3551_v30, %v3119_v29  ;;  %v2601_v12 = vld [vmem:[#allocation7 + $0x2a0] sm:$0xf0]  ;;  %v2607_v13 = vld [vmem:[#allocation7 + $0x228] sm:$0xf]  ;;  %v3375_v28 = vld [vmem:[#allocation7 + $0x12c] sm:$0xf] }
  0x4e   :  { %1816 = vmatpush.bf16.msrb.mxu1 %v2584_v36  ;;  %v3518_v36 = vld [vmem:[#allocation7 + $0x59c] sm:$0xf0]  ;;  %v2604_v18 = vor.u32 %v3406_v11, %v2601_v12  ;;  %v3374_v24 = vld [vmem:[#allocation7 + $0x124] sm:$0xf]  ;;  %v3391_v27 = vld [vmem:[#allocation7 + $0x1a4] sm:$0xf0] }
  0x4f   :  { %1855 = vmatpush.bf16.msra.mxu0 %v2980_v17  ;;  %1830 = vmatpush.bf16.msrb.mxu2 %v2588_v40  ;;  %v2985_v40 = vld [vmem:[#allocation7 + $0x5a0] sm:$0xf0]  ;;  %v2984_v45 = vor.u32 %v3518_v36, %v2983_v35  ;;  %v2481_v29 = vld [vmem:[#allocation7 + $0x1a8] sm:$0xf0]  ;;  %v2343_v30 = vld [vmem:[#allocation7 + $0x20] sm:$0xf] }
  0x50   :  { %1844 = vmatpush.bf16.msrb.mxu3 %v2592_v41  ;;  %v2991_v41 = vld [vmem:[#allocation7 + $0x528] sm:$0xf]  ;;  %v2988_v46 = vor.u32 %v3502_v39, %v2985_v40  ;;  %v2345_v35 = vld [vmem:[#allocation7 + $0xa0] sm:$0xf0]  ;;  %v3343_v40 = vld [vmem:[#allocation7 + $0x2c] sm:$0xf] }
  0x51   :  { %v2992_v49 = vor.u32 %v3519_v42, %v2991_v41  ;;  %v3359_v39 = vld [vmem:[#allocation7 + $0xa4] sm:$0xf0]  ;;  %v2353_v41 = vld [vmem:[#allocation7 + $0xa8] sm:$0xf0]  ;;  %v3255_v42 = vld [vmem:[#allocation7 + $0x730] sm:$0xf] }
  0x52   :  { %1817 = vmatpush.bf16.msrb.mxu1 %v2456_v48  ;;  %v3486_v48 = vld [vmem:[#allocation7 + $0x49c] sm:$0xf0]  ;;  %v3521_v11 = vld [vmem:[#allocation7 + $0x5b4] sm:$0xf0]  ;;  %v3505_v12 = vld [vmem:[#allocation7 + $0x53c] sm:$0xf] }
  0x53   :  { %1856 = vmatpush.bf16.msra.mxu0 %v2852_v20  ;;  %1831 = vmatpush.bf16.msrb.mxu2 %v2460_v52  ;;  %v2857_v52 = vld [vmem:[#allocation7 + $0x4a0] sm:$0xf0]  ;;  %v2856_v57 = vor.u32 %v3486_v48, %v2855_v47 }
  0x54   :  { %1845 = vmatpush.bf16.msrb.mxu3 %v2464_v53  ;;  %v2863_v53 = vld [vmem:[#allocation7 + $0x428] sm:$0xf]  ;;  %v2860_v58 = vor.u32 %v3470_v51, %v2857_v52  ;;  %v3265_v51 = vld [vmem:[#allocation7 + $0x7b8] sm:$0xf0] }
  0x55   :  { %v2864_v61 = vor.u32 %v3487_v54, %v2863_v53  ;;  %v2356_v53 = vor.u32 %v3343_v40, %v2353_v41  ;;  %v2615_v41 = vld [vmem:[#allocation7 + $0x230] sm:$0xf] }
  0x56   :  { %1818 = vmatpush.bf16.msrb.mxu1 %v2328_v60  ;;  %v3454_v60 = vld [vmem:[#allocation7 + $0x39c] sm:$0xf0] }
  0x57   :  { %1857 = vmatpush.bf16.msra.mxu0 %v2724_v32  ;;  %1832 = vmatpush.bf16.msrb.mxu2 %v2332_v0  ;;  %v3121_v32 = vld [vmem:[#allocation7 + $0x6a8] sm:$0xf0]  ;;  %v2729_v0 = vld [vmem:[#allocation7 + $0x3a0] sm:$0xf0] }
  0x58   :  { %1846 = vmatpush.bf16.msrb.mxu3 %v2336_v1  ;;  %v3124_v38 = vor.u32 %v3535_v31, %v3121_v32  ;;  %v2735_v1 = vld [vmem:[#allocation7 + $0x328] sm:$0xf] }
  0x5b   :  { %1858 = vmatpush.bf16.msra.mxu0 %v2596_v44  ;;  %v2993_v44 = vld [vmem:[#allocation7 + $0x5a8] sm:$0xf0] }
  0x5c   :  { %v2996_v50 = vor.u32 %v3503_v43, %v2993_v44  ;;  %v3584_v43 = vld [vmem:[#allocation7 + $0x7ac] sm:$0xf0]  ;;  %v3568_v44 = vld [vmem:[#allocation7 + $0x734] sm:$0xf] }
  0x5d   :  { %v3256_v54 = vor.u32 %v3584_v43, %v3255_v42  ;;  %v3424_v42 = vld [vmem:[#allocation7 + $0x2ac] sm:$0xf0] }
  0x5f   :  { %1859 = vmatpush.bf16.msra.mxu0 %v2468_v56  ;;  %v2865_v56 = vld [vmem:[#allocation7 + $0x4a8] sm:$0xf0] }
  0x60   :  { %v2868_v62 = vor.u32 %v3471_v55, %v2865_v56  ;;  %v3127_v56 = vld [vmem:[#allocation7 + $0x630] sm:$0xf] }
  0x63   :  { %1860 = vmatpush.bf16.msra.mxu0 %v2340_v4  ;;  %v2737_v4 = vld [vmem:[#allocation7 + $0x3a8] sm:$0xf0] }
  0x64   :  { %v2740_v10 = vor.u32 %v3439_v3, %v2737_v4  ;;  %v2999_v4 = vld [vmem:[#allocation7 + $0x530] sm:$0xf] }
  0xa3   :  { %v139_v5 = vpop.f32.mrf.mxu0 }
  0xa4   :  { %v140_v7 = vadd.f32 %v3605_v6, %v139_v5  ;;  %v2728_v5 = vor.u32 %v3454_v60, %v2727_v59  ;;  %v3536_v60 = vld [vmem:[#allocation7 + $0x634] sm:$0xf] }
  0xa6   :  { %v144_v16 = vmax.f32 %v140_v7, 0.0  ;;  %v2599_v7 = vld [vmem:[#allocation7 + $0x220] sm:$0xf] }
  0xab   :  { %v141_v8 = vpop.f32.mrf.mxu0 }
  0xac   :  { %v142_v9 = vadd.f32 %v3605_v6, %v141_v8  ;;  %v2732_v6 = vor.u32 %v3438_v63, %v2729_v0  ;;  %v3422_v8 = vld [vmem:[#allocation7 + $0x29c] sm:$0xf0]  ;;  %v3553_v63 = vld [vmem:[#allocation7 + $0x6b4] sm:$0xf0]  ;;  %v3537_v0 = vld [vmem:[#allocation7 + $0x63c] sm:$0xf] }
  0xae   :  { %v145_v17 = vmax.f32 %v142_v9, 0.0  ;;  %v2736_v9 = vor.u32 %v3455_v2, %v2735_v1  ;;  %v3137_v1 = vld [vmem:[#allocation7 + $0x6b8] sm:$0xf0] }
  0xb0   :  { %v3791_v20 = vpack.c.bf16 %v145_v17, %v144_v16  ;;  %v2609_v16 = vld [vmem:[#allocation7 + $0x2a8] sm:$0xf0]  ;;  %v2600_v17 = vor.u32 %v3422_v8, %v2599_v7  ;;  %v3140_v7 = vor.u32 %v3537_v0, %v3137_v1  ;;  %v3504_v8 = vld [vmem:[#allocation7 + $0x534] sm:$0xf] }
  0xb1   :  { %v2612_v23 = vor.u32 %v3407_v15, %v2609_v16  ;;  %v2871_v16 = vld [vmem:[#allocation7 + $0x430] sm:$0xf] }
  0xb2   :  { %1763 = vmatmul.bf16.vlgmr.msra.gmra.mxu1 %v3791_v20  ;;  %1777 = vmatmul.bf16.vlgmr.msra.gmra.mxu2 %v3791_v20 }
  0xb3   :  { %1791 = vmatmul.bf16.vlgmr.msra.gmra.mxu3 %v3791_v20  ;;  %1805 = vmatmul.bf16.vlgmr.msrb.gmra.mxu0 %v3791_v20 }
  0xb4   :  { %1867 = vmatpush.bf16.msra.mxu1 %v3240_v21  ;;  %1881 = vmatpush.bf16.msra.mxu2 %v3244_v22  ;;  %v3390_v21 = vld [vmem:[#allocation7 + $0x19c] sm:$0xf0]  ;;  %v2608_v22 = vor.u32 %v3423_v14, %v2607_v13  ;;  %v3009_v13 = vld [vmem:[#allocation7 + $0x5b8] sm:$0xf0] }
  0xb5   :  { %1895 = vmatpush.bf16.msra.mxu3 %v3248_v25  ;;  %1909 = vmatpush.bf16.msrb.mxu0 %v3252_v26  ;;  %v2473_v25 = vld [vmem:[#allocation7 + $0x1a0] sm:$0xf0]  ;;  %v2479_v26 = vld [vmem:[#allocation7 + $0x128] sm:$0xf]  ;;  %v2472_v31 = vor.u32 %v3390_v21, %v2471_v19  ;;  %v3012_v19 = vor.u32 %v3505_v12, %v3009_v13  ;;  %v3472_v21 = vld [vmem:[#allocation7 + $0x434] sm:$0xf] }
  0xb6   :  { %v2476_v32 = vor.u32 %v3374_v24, %v2473_v25  ;;  %v2480_v36 = vor.u32 %v3391_v27, %v2479_v26  ;;  %v3489_v24 = vld [vmem:[#allocation7 + $0x4b4] sm:$0xf0]  ;;  %v3473_v25 = vld [vmem:[#allocation7 + $0x43c] sm:$0xf]  ;;  %v3586_v12 = vld [vmem:[#allocation7 + $0x7bc] sm:$0xf0] }
  0xb7   :  { %v2881_v26 = vld [vmem:[#allocation7 + $0x4b8] sm:$0xf0]  ;;  %v3570_v13 = vld [vmem:[#allocation7 + $0x744] sm:$0xf] }
  0xb8   :  { %1868 = vmatpush.bf16.msra.mxu1 %v3112_v33  ;;  %1882 = vmatpush.bf16.msra.mxu2 %v3116_v34  ;;  %v3358_v33 = vld [vmem:[#allocation7 + $0x9c] sm:$0xf0]  ;;  %v3342_v34 = vld [vmem:[#allocation7 + $0x24] sm:$0xf] }
  0xb9   :  { %1896 = vmatpush.bf16.msra.mxu3 %v3120_v37  ;;  %1910 = vmatpush.bf16.msrb.mxu0 %v3124_v38  ;;  %v2484_v37 = vor.u32 %v3375_v28, %v2481_v29  ;;  %v2351_v38 = vld [vmem:[#allocation7 + $0x28] sm:$0xf]  ;;  %v2344_v47 = vor.u32 %v3358_v33, %v2343_v30  ;;  %v2348_v48 = vor.u32 %v3342_v34, %v2345_v35  ;;  %v2743_v29 = vld [vmem:[#allocation7 + $0x330] sm:$0xf]  ;;  %v3440_v33 = vld [vmem:[#allocation7 + $0x334] sm:$0xf] }
  0xba   :  { %v2352_v52 = vor.u32 %v3359_v39, %v2351_v38  ;;  %v3456_v30 = vld [vmem:[#allocation7 + $0x3ac] sm:$0xf0]  ;;  %v2745_v34 = vld [vmem:[#allocation7 + $0x3b0] sm:$0xf0]  ;;  %v2751_v35 = vld [vmem:[#allocation7 + $0x338] sm:$0xf] }
  0xbb   :  { %v2753_v38 = vld [vmem:[#allocation7 + $0x3b8] sm:$0xf0]  ;;  %v2744_v39 = vor.u32 %v3456_v30, %v2743_v29  ;;  %v2748_v40 = vor.u32 %v3440_v33, %v2745_v34  ;;  %v3538_v30 = vld [vmem:[#allocation7 + $0x644] sm:$0xf]  ;;  %v3555_v33 = vld [vmem:[#allocation7 + $0x6c4] sm:$0xf0] }
  0xbc   :  { %1869 = vmatpush.bf16.msra.mxu1 %v2984_v45  ;;  %1883 = vmatpush.bf16.msra.mxu2 %v2988_v46  ;;  %v3257_v45 = vld [vmem:[#allocation7 + $0x7b0] sm:$0xf0]  ;;  %v3263_v46 = vld [vmem:[#allocation7 + $0x738] sm:$0xf]  ;;  %v3539_v34 = vld [vmem:[#allocation7 + $0x64c] sm:$0xf] }
  0xbd   :  { %1897 = vmatpush.bf16.msra.mxu3 %v2992_v49  ;;  %1911 = vmatpush.bf16.msrb.mxu0 %v2996_v50  ;;  %v3585_v49 = vld [vmem:[#allocation7 + $0x7b4] sm:$0xf0]  ;;  %v3569_v50 = vld [vmem:[#allocation7 + $0x73c] sm:$0xf]  ;;  %v3260_v55 = vor.u32 %v3568_v44, %v3257_v45  ;;  %v3408_v45 = vld [vmem:[#allocation7 + $0x234] sm:$0xf] }
  0xbe   :  { %v3268_v59 = vor.u32 %v3569_v50, %v3265_v51  ;;  %v2625_v50 = vld [vmem:[#allocation7 + $0x2b8] sm:$0xf0]  ;;  %v2616_v51 = vor.u32 %v3424_v42, %v2615_v41  ;;  %v3506_v42 = vld [vmem:[#allocation7 + $0x544] sm:$0xf] }
  0xc0   :  { %1870 = vmatpush.bf16.msra.mxu1 %v2856_v57  ;;  %1884 = vmatpush.bf16.msra.mxu2 %v2860_v58  ;;  %v3552_v57 = vld [vmem:[#allocation7 + $0x6ac] sm:$0xf0]  ;;  %v3264_v58 = vor.u32 %v3585_v49, %v3263_v46  ;;  %v2617_v46 = vld [vmem:[#allocation7 + $0x2b0] sm:$0xf0]  ;;  %v3409_v49 = vld [vmem:[#allocation7 + $0x23c] sm:$0xf] }
  0xc1   :  { %1898 = vmatpush.bf16.msra.mxu3 %v2864_v61  ;;  %1912 = vmatpush.bf16.msrb.mxu0 %v2868_v62  ;;  %v3129_v61 = vld [vmem:[#allocation7 + $0x6b0] sm:$0xf0]  ;;  %v3135_v62 = vld [vmem:[#allocation7 + $0x638] sm:$0xf]  ;;  %v3128_v2 = vor.u32 %v3552_v57, %v3127_v56  ;;  %v2628_v56 = vor.u32 %v3409_v49, %v2625_v50  ;;  %v2887_v50 = vld [vmem:[#allocation7 + $0x440] sm:$0xf] }
  0xc2   :  { %1819 = vmatmul.bf16.vlgmr.msrb.gmra.mxu1 %v3791_v20  ;;  %1833 = vmatmul.bf16.vlgmr.msrb.gmra.mxu2 %v3791_v20  ;;  %v3132_v3 = vor.u32 %v3536_v60, %v3129_v61  ;;  %v3376_v57 = vld [vmem:[#allocation7 + $0x134] sm:$0xf]  ;;  %v3393_v60 = vld [vmem:[#allocation7 + $0x1b4] sm:$0xf0]  ;;  %v3377_v61 = vld [vmem:[#allocation7 + $0x13c] sm:$0xf] }
  0xc3   :  { %1847 = vmatmul.bf16.vlgmr.msrb.gmra.mxu3 %v3791_v20  ;;  %1861 = vmatmul.bf16.vlgmr.msra.gmra.mxu0 %v3791_v20 }
  0xc4   :  { %1871 = vmatpush.bf16.msra.mxu1 %v2728_v5  ;;  %1885 = vmatpush.bf16.msra.mxu2 %v2732_v6  ;;  %v3520_v5 = vld [vmem:[#allocation7 + $0x5ac] sm:$0xf0]  ;;  %v3136_v6 = vor.u32 %v3553_v63, %v3135_v62  ;;  %v2497_v62 = vld [vmem:[#allocation7 + $0x1b8] sm:$0xf0] }
  0xc5   :  { %1899 = vmatpush.bf16.msra.mxu3 %v2736_v9  ;;  %1913 = vmatpush.bf16.msrb.mxu0 %v2740_v10  ;;  %v3001_v9 = vld [vmem:[#allocation7 + $0x5b0] sm:$0xf0]  ;;  %v3007_v10 = vld [vmem:[#allocation7 + $0x538] sm:$0xf]  ;;  %v3000_v14 = vor.u32 %v3520_v5, %v2999_v4  ;;  %v2359_v63 = vld [vmem:[#allocation7 + $0x30] sm:$0xf] }
  0xc6   :  { %v3004_v15 = vor.u32 %v3504_v8, %v3001_v9  ;;  %v2361_v4 = vld [vmem:[#allocation7 + $0xb0] sm:$0xf0]  ;;  %v3361_v8 = vld [vmem:[#allocation7 + $0xb4] sm:$0xf0]  ;;  %v3345_v9 = vld [vmem:[#allocation7 + $0x3c] sm:$0xf] }
  0xc8   :  { %1872 = vmatpush.bf16.msra.mxu1 %v2600_v17  ;;  %1886 = vmatpush.bf16.msra.mxu2 %v2604_v18  ;;  %v3488_v17 = vld [vmem:[#allocation7 + $0x4ac] sm:$0xf0]  ;;  %v3008_v18 = vor.u32 %v3521_v11, %v3007_v10  ;;  %v2369_v10 = vld [vmem:[#allocation7 + $0xb8] sm:$0xf0]  ;;  %v3271_v11 = vld [vmem:[#allocation7 + $0x740] sm:$0xf] }
  0xc9   :  { %1900 = vmatpush.bf16.msra.mxu3 %v2608_v22  ;;  %1914 = vmatpush.bf16.msrb.mxu0 %v2612_v23  ;;  %v2873_v22 = vld [vmem:[#allocation7 + $0x4b0] sm:$0xf0]  ;;  %v2879_v23 = vld [vmem:[#allocation7 + $0x438] sm:$0xf]  ;;  %v2872_v27 = vor.u32 %v3488_v17, %v2871_v16 }
  0xca   :  { %v2876_v28 = vor.u32 %v3472_v21, %v2873_v22  ;;  %v3281_v21 = vld [vmem:[#allocation7 + $0x7c8] sm:$0xf0] }
  0xcc   :  { %1873 = vmatpush.bf16.msra.mxu1 %v2472_v31  ;;  %1887 = vmatpush.bf16.msra.mxu2 %v2476_v32  ;;  %v2880_v31 = vor.u32 %v3489_v24, %v2879_v23  ;;  %v2884_v32 = vor.u32 %v3473_v25, %v2881_v26  ;;  %v2372_v23 = vor.u32 %v3345_v9, %v2369_v10  ;;  %v3143_v26 = vld [vmem:[#allocation7 + $0x640] sm:$0xf] }
  0xcd   :  { %1901 = vmatpush.bf16.msra.mxu3 %v2480_v36  ;;  %1915 = vmatpush.bf16.msrb.mxu0 %v2484_v37  ;;  %v3457_v36 = vld [vmem:[#allocation7 + $0x3b4] sm:$0xf0]  ;;  %v3441_v37 = vld [vmem:[#allocation7 + $0x33c] sm:$0xf]  ;;  %v3272_v24 = vor.u32 %v3586_v12, %v3271_v11  ;;  %v2631_v10 = vld [vmem:[#allocation7 + $0x240] sm:$0xf] }
  0xce   :  { %v2752_v43 = vor.u32 %v3457_v36, %v2751_v35  ;;  %v2756_v44 = vor.u32 %v3441_v37, %v2753_v38  ;;  %v3153_v35 = vld [vmem:[#allocation7 + $0x6c8] sm:$0xf0]  ;;  %v3015_v38 = vld [vmem:[#allocation7 + $0x540] sm:$0xf] }
  0xcf   :  { %v3156_v41 = vor.u32 %v3539_v34, %v3153_v35  ;;  %v3426_v11 = vld [vmem:[#allocation7 + $0x2bc] sm:$0xf0] }
  0xd0   :  { %1874 = vmatpush.bf16.msra.mxu1 %v2344_v47  ;;  %1888 = vmatpush.bf16.msra.mxu2 %v2348_v48  ;;  %v2623_v47 = vld [vmem:[#allocation7 + $0x238] sm:$0xf] }
  0xd1   :  { %1902 = vmatpush.bf16.msra.mxu3 %v2352_v52  ;;  %1916 = vmatpush.bf16.msrb.mxu0 %v2356_v53  ;;  %v3425_v48 = vld [vmem:[#allocation7 + $0x2b4] sm:$0xf0]  ;;  %v2620_v52 = vor.u32 %v3408_v45, %v2617_v46  ;;  %v2487_v53 = vld [vmem:[#allocation7 + $0x130] sm:$0xf]  ;;  %v3523_v45 = vld [vmem:[#allocation7 + $0x5c4] sm:$0xf0] }
  0xd2   :  { %v3507_v46 = vld [vmem:[#allocation7 + $0x54c] sm:$0xf] }
  0xd3   :  { %1875 = vmatmul.bf16.vlgmr.msra.gmra.mxu1 %v3791_v20  ;;  %1889 = vmatmul.bf16.vlgmr.msra.gmra.mxu2 %v3791_v20 }
  0xd4   :  { %1923 = vmatpush.bf16.msrb.mxu1 %v3256_v54  ;;  %1937 = vmatpush.bf16.msrb.mxu2 %v3260_v55  ;;  %v3392_v54 = vld [vmem:[#allocation7 + $0x1ac] sm:$0xf0]  ;;  %v2624_v55 = vor.u32 %v3425_v48, %v2623_v47  ;;  %v3025_v47 = vld [vmem:[#allocation7 + $0x5c8] sm:$0xf0] }
  0xd5   :  { %1951 = vmatpush.bf16.msrb.mxu3 %v3264_v58  ;;  %1965 = vmatpush.bf16.msra.mxu0 %v3268_v59  ;;  %v2489_v58 = vld [vmem:[#allocation7 + $0x1b0] sm:$0xf0]  ;;  %v2495_v59 = vld [vmem:[#allocation7 + $0x138] sm:$0xf]  ;;  %v2488_v0 = vor.u32 %v3392_v54, %v2487_v53  ;;  %v3028_v53 = vor.u32 %v3507_v46, %v3025_v47  ;;  %v3474_v54 = vld [vmem:[#allocation7 + $0x444] sm:$0xf] }
  0xd6   :  { %1903 = vmatmul.bf16.vlgmr.msra.gmra.mxu3 %v3791_v20  ;;  %1917 = vmatmul.bf16.vlgmr.msrb.gmra.mxu0 %v3791_v20  ;;  %v2492_v1 = vor.u32 %v3376_v57, %v2489_v58  ;;  %v2496_v5 = vor.u32 %v3393_v60, %v2495_v59  ;;  %v3491_v57 = vld [vmem:[#allocation7 + $0x4c4] sm:$0xf0]  ;;  %v3475_v58 = vld [vmem:[#allocation7 + $0x44c] sm:$0xf]  ;;  %v3588_v46 = vld [vmem:[#allocation7 + $0x7cc] sm:$0xf0] }
  0xd7   :  { %v2897_v59 = vld [vmem:[#allocation7 + $0x4c8] sm:$0xf0]  ;;  %v3572_v47 = vld [vmem:[#allocation7 + $0x754] sm:$0xf] }
  0xd8   :  { %1924 = vmatpush.bf16.msrb.mxu1 %v3128_v2  ;;  %1938 = vmatpush.bf16.msrb.mxu2 %v3132_v3  ;;  %v3360_v2 = vld [vmem:[#allocation7 + $0xac] sm:$0xf0]  ;;  %v3344_v3 = vld [vmem:[#allocation7 + $0x34] sm:$0xf] }
  0xd9   :  { %1952 = vmatpush.bf16.msrb.mxu3 %v3136_v6  ;;  %1966 = vmatpush.bf16.msra.mxu0 %v3140_v7  ;;  %v2500_v6 = vor.u32 %v3377_v61, %v2497_v62  ;;  %v2367_v7 = vld [vmem:[#allocation7 + $0x38] sm:$0xf]  ;;  %v2360_v16 = vor.u32 %v3360_v2, %v2359_v63  ;;  %v2364_v17 = vor.u32 %v3344_v3, %v2361_v4  ;;  %v2759_v62 = vld [vmem:[#allocation7 + $0x340] sm:$0xf]  ;;  %v3442_v2 = vld [vmem:[#allocation7 + $0x344] sm:$0xf] }
  0xda   :  { %v2368_v22 = vor.u32 %v3361_v8, %v2367_v7  ;;  %v3458_v63 = vld [vmem:[#allocation7 + $0x3bc] sm:$0xf0]  ;;  %v2761_v3 = vld [vmem:[#allocation7 + $0x3c0] sm:$0xf0]  ;;  %v2767_v4 = vld [vmem:[#allocation7 + $0x348] sm:$0xf] }
  0xdb   :  { %v2769_v7 = vld [vmem:[#allocation7 + $0x3c8] sm:$0xf0]  ;;  %v2760_v8 = vor.u32 %v3458_v63, %v2759_v62  ;;  %v2764_v9 = vor.u32 %v3442_v2, %v2761_v3  ;;  %v3540_v63 = vld [vmem:[#allocation7 + $0x654] sm:$0xf]  ;;  %v3557_v2 = vld [vmem:[#allocation7 + $0x6d4] sm:$0xf0] }
  0xdc   :  { %1925 = vmatpush.bf16.msrb.mxu1 %v3000_v14  ;;  %1939 = vmatpush.bf16.msrb.mxu2 %v3004_v15  ;;  %v3273_v14 = vld [vmem:[#allocation7 + $0x7c0] sm:$0xf0]  ;;  %v3279_v15 = vld [vmem:[#allocation7 + $0x748] sm:$0xf]  ;;  %v3541_v3 = vld [vmem:[#allocation7 + $0x65c] sm:$0xf] }
  0xdd   :  { %1953 = vmatpush.bf16.msrb.mxu3 %v3008_v18  ;;  %1967 = vmatpush.bf16.msra.mxu0 %v3012_v19  ;;  %v3587_v18 = vld [vmem:[#allocation7 + $0x7c4] sm:$0xf0]  ;;  %v3571_v19 = vld [vmem:[#allocation7 + $0x74c] sm:$0xf]  ;;  %v3276_v25 = vor.u32 %v3570_v13, %v3273_v14  ;;  %v3410_v14 = vld [vmem:[#allocation7 + $0x244] sm:$0xf] }
  0xde   :  { %v3284_v29 = vor.u32 %v3571_v19, %v3281_v21  ;;  %v2641_v19 = vld [vmem:[#allocation7 + $0x2c8] sm:$0xf0]  ;;  %v2632_v21 = vor.u32 %v3426_v11, %v2631_v10  ;;  %v3508_v11 = vld [vmem:[#allocation7 + $0x554] sm:$0xf] }
  0xe0   :  { %1926 = vmatpush.bf16.msrb.mxu1 %v2872_v27  ;;  %1940 = vmatpush.bf16.msrb.mxu2 %v2876_v28  ;;  %v3554_v27 = vld [vmem:[#allocation7 + $0x6bc] sm:$0xf0]  ;;  %v3280_v28 = vor.u32 %v3587_v18, %v3279_v15  ;;  %v2633_v15 = vld [vmem:[#allocation7 + $0x2c0] sm:$0xf0]  ;;  %v3411_v18 = vld [vmem:[#allocation7 + $0x24c] sm:$0xf] }
  0xe1   :  { %1954 = vmatpush.bf16.msrb.mxu3 %v2880_v31  ;;  %1968 = vmatpush.bf16.msra.mxu0 %v2884_v32  ;;  %v3145_v31 = vld [vmem:[#allocation7 + $0x6c0] sm:$0xf0]  ;;  %v3151_v32 = vld [vmem:[#allocation7 + $0x648] sm:$0xf]  ;;  %v3144_v36 = vor.u32 %v3554_v27, %v3143_v26  ;;  %v2644_v26 = vor.u32 %v3411_v18, %v2641_v19  ;;  %v2903_v19 = vld [vmem:[#allocation7 + $0x450] sm:$0xf] }
  0xe2   :  { %v3148_v37 = vor.u32 %v3538_v30, %v3145_v31  ;;  %v3378_v27 = vld [vmem:[#allocation7 + $0x144] sm:$0xf]  ;;  %v3395_v30 = vld [vmem:[#allocation7 + $0x1c4] sm:$0xf0]  ;;  %v3379_v31 = vld [vmem:[#allocation7 + $0x14c] sm:$0xf] }
  0xe4   :  { %1927 = vmatpush.bf16.msrb.mxu1 %v2744_v39  ;;  %1941 = vmatpush.bf16.msrb.mxu2 %v2748_v40  ;;  %v3522_v39 = vld [vmem:[#allocation7 + $0x5bc] sm:$0xf0]  ;;  %v3152_v40 = vor.u32 %v3555_v33, %v3151_v32  ;;  %v2513_v32 = vld [vmem:[#allocation7 + $0x1c8] sm:$0xf0] }
  0xe5   :  { %1955 = vmatpush.bf16.msrb.mxu3 %v2752_v43  ;;  %1969 = vmatpush.bf16.msra.mxu0 %v2756_v44  ;;  %v3017_v43 = vld [vmem:[#allocation7 + $0x5c0] sm:$0xf0]  ;;  %v3023_v44 = vld [vmem:[#allocation7 + $0x548] sm:$0xf]  ;;  %v3016_v48 = vor.u32 %v3522_v39, %v3015_v38  ;;  %v2375_v33 = vld [vmem:[#allocation7 + $0x40] sm:$0xf] }
  0xe6   :  { %v3020_v49 = vor.u32 %v3506_v42, %v3017_v43  ;;  %v2377_v38 = vld [vmem:[#allocation7 + $0xc0] sm:$0xf0]  ;;  %v3363_v42 = vld [vmem:[#allocation7 + $0xc4] sm:$0xf0]  ;;  %v3347_v43 = vld [vmem:[#allocation7 + $0x4c] sm:$0xf] }
  0xe8   :  { %1928 = vmatpush.bf16.msrb.mxu1 %v2616_v51  ;;  %1942 = vmatpush.bf16.msrb.mxu2 %v2620_v52  ;;  %v3490_v51 = vld [vmem:[#allocation7 + $0x4bc] sm:$0xf0]  ;;  %v3024_v52 = vor.u32 %v3523_v45, %v3023_v44  ;;  %v2385_v44 = vld [vmem:[#allocation7 + $0xc8] sm:$0xf0]  ;;  %v3287_v45 = vld [vmem:[#allocation7 + $0x750] sm:$0xf] }
  0xe9   :  { %1956 = vmatpush.bf16.msrb.mxu3 %v2624_v55  ;;  %1970 = vmatpush.bf16.msra.mxu0 %v2628_v56  ;;  %v2889_v55 = vld [vmem:[#allocation7 + $0x4c0] sm:$0xf0]  ;;  %v2895_v56 = vld [vmem:[#allocation7 + $0x448] sm:$0xf]  ;;  %v2888_v60 = vor.u32 %v3490_v51, %v2887_v50 }
  0xea   :  { %v2892_v61 = vor.u32 %v3474_v54, %v2889_v55  ;;  %v3297_v54 = vld [vmem:[#allocation7 + $0x7d8] sm:$0xf0] }
  0xec   :  { %1929 = vmatpush.bf16.msrb.mxu1 %v2488_v0  ;;  %1943 = vmatpush.bf16.msrb.mxu2 %v2492_v1  ;;  %v2896_v0 = vor.u32 %v3491_v57, %v2895_v56  ;;  %v2900_v1 = vor.u32 %v3475_v58, %v2897_v59  ;;  %v2388_v56 = vor.u32 %v3347_v43, %v2385_v44  ;;  %v3159_v59 = vld [vmem:[#allocation7 + $0x650] sm:$0xf] }
  0xed   :  { %1957 = vmatpush.bf16.msrb.mxu3 %v2496_v5  ;;  %1971 = vmatpush.bf16.msra.mxu0 %v2500_v6  ;;  %v3459_v5 = vld [vmem:[#allocation7 + $0x3c4] sm:$0xf0]  ;;  %v3443_v6 = vld [vmem:[#allocation7 + $0x34c] sm:$0xf]  ;;  %v3288_v57 = vor.u32 %v3588_v46, %v3287_v45  ;;  %v2647_v44 = vld [vmem:[#allocation7 + $0x250] sm:$0xf] }
  0xee   :  { %v2768_v12 = vor.u32 %v3459_v5, %v2767_v4  ;;  %v2772_v13 = vor.u32 %v3443_v6, %v2769_v7  ;;  %v3169_v4 = vld [vmem:[#allocation7 + $0x6d8] sm:$0xf0]  ;;  %v3031_v7 = vld [vmem:[#allocation7 + $0x550] sm:$0xf] }
  0xef   :  { %v3172_v10 = vor.u32 %v3541_v3, %v3169_v4  ;;  %v3428_v45 = vld [vmem:[#allocation7 + $0x2cc] sm:$0xf0] }
  0xf0   :  { %1930 = vmatpush.bf16.msrb.mxu1 %v2360_v16  ;;  %1944 = vmatpush.bf16.msrb.mxu2 %v2364_v17  ;;  %v2639_v16 = vld [vmem:[#allocation7 + $0x248] sm:$0xf] }
  0xf1   :  { %1958 = vmatpush.bf16.msrb.mxu3 %v2368_v22  ;;  %1972 = vmatpush.bf16.msra.mxu0 %v2372_v23  ;;  %v3427_v17 = vld [vmem:[#allocation7 + $0x2c4] sm:$0xf0]  ;;  %v2636_v22 = vor.u32 %v3410_v14, %v2633_v15  ;;  %v2503_v23 = vld [vmem:[#allocation7 + $0x140] sm:$0xf]  ;;  %v3525_v14 = vld [vmem:[#allocation7 + $0x5d4] sm:$0xf0] }
  0xf2   :  { %v3509_v15 = vld [vmem:[#allocation7 + $0x55c] sm:$0xf] }
  0xf3   :  { %1931 = vmatmul.bf16.vlgmr.msrb.gmra.mxu1 %v3791_v20  ;;  %1945 = vmatmul.bf16.vlgmr.msrb.gmra.mxu2 %v3791_v20 }
  0xf4   :  { %1979 = vmatpush.bf16.msra.mxu1 %v3272_v24  ;;  %1993 = vmatpush.bf16.msra.mxu2 %v3276_v25  ;;  %v3394_v24 = vld [vmem:[#allocation7 + $0x1bc] sm:$0xf0]  ;;  %v2640_v25 = vor.u32 %v3427_v17, %v2639_v16  ;;  %v3041_v16 = vld [vmem:[#allocation7 + $0x5d8] sm:$0xf0] }
  0xf5   :  { %2007 = vmatpush.bf16.msra.mxu3 %v3280_v28  ;;  %2021 = vmatpush.bf16.msrb.mxu0 %v3284_v29  ;;  %v2505_v28 = vld [vmem:[#allocation7 + $0x1c0] sm:$0xf0]  ;;  %v2511_v29 = vld [vmem:[#allocation7 + $0x148] sm:$0xf]  ;;  %v2504_v34 = vor.u32 %v3394_v24, %v2503_v23  ;;  %v3044_v23 = vor.u32 %v3509_v15, %v3041_v16  ;;  %v3476_v24 = vld [vmem:[#allocation7 + $0x454] sm:$0xf] }
  0xf6   :  { %1959 = vmatmul.bf16.vlgmr.msrb.gmra.mxu3 %v3791_v20  ;;  %1973 = vmatmul.bf16.vlgmr.msra.gmra.mxu0 %v3791_v20  ;;  %v2508_v35 = vor.u32 %v3378_v27, %v2505_v28  ;;  %v2512_v39 = vor.u32 %v3395_v30, %v2511_v29  ;;  %v3493_v27 = vld [vmem:[#allocation7 + $0x4d4] sm:$0xf0]  ;;  %v3477_v28 = vld [vmem:[#allocation7 + $0x45c] sm:$0xf]  ;;  %v3590_v15 = vld [vmem:[#allocation7 + $0x7dc] sm:$0xf0] }
  0xf7   :  { %v2913_v29 = vld [vmem:[#allocation7 + $0x4d8] sm:$0xf0]  ;;  %v3574_v16 = vld [vmem:[#allocation7 + $0x764] sm:$0xf] }
  0xf8   :  { %1980 = vmatpush.bf16.msra.mxu1 %v3144_v36  ;;  %1994 = vmatpush.bf16.msra.mxu2 %v3148_v37  ;;  %v3362_v36 = vld [vmem:[#allocation7 + $0xbc] sm:$0xf0]  ;;  %v3346_v37 = vld [vmem:[#allocation7 + $0x44] sm:$0xf] }
  0xf9   :  { %2008 = vmatpush.bf16.msra.mxu3 %v3152_v40  ;;  %2022 = vmatpush.bf16.msrb.mxu0 %v3156_v41  ;;  %v2516_v40 = vor.u32 %v3379_v31, %v2513_v32  ;;  %v2383_v41 = vld [vmem:[#allocation7 + $0x48] sm:$0xf]  ;;  %v2376_v50 = vor.u32 %v3362_v36, %v2375_v33  ;;  %v2380_v51 = vor.u32 %v3346_v37, %v2377_v38  ;;  %v2775_v32 = vld [vmem:[#allocation7 + $0x350] sm:$0xf]  ;;  %v3444_v36 = vld [vmem:[#allocation7 + $0x354] sm:$0xf] }
  0xfa   :  { %v2384_v55 = vor.u32 %v3363_v42, %v2383_v41  ;;  %v3460_v33 = vld [vmem:[#allocation7 + $0x3cc] sm:$0xf0]  ;;  %v2777_v37 = vld [vmem:[#allocation7 + $0x3d0] sm:$0xf0]  ;;  %v2783_v38 = vld [vmem:[#allocation7 + $0x358] sm:$0xf] }
  0xfb   :  { %v2785_v41 = vld [vmem:[#allocation7 + $0x3d8] sm:$0xf0]  ;;  %v2776_v42 = vor.u32 %v3460_v33, %v2775_v32  ;;  %v2780_v43 = vor.u32 %v3444_v36, %v2777_v37  ;;  %v3813_v36 = vld [vmem:[#allocation8] sm:$0xff]  ;;  %v3559_v37 = vld [vmem:[#allocation7 + $0x6e4] sm:$0xf0] }
  0xfc   :  { %1981 = vmatpush.bf16.msra.mxu1 %v3016_v48  ;;  %1995 = vmatpush.bf16.msra.mxu2 %v3020_v49  ;;  %v3289_v48 = vld [vmem:[#allocation7 + $0x7d0] sm:$0xf0]  ;;  %v3295_v49 = vld [vmem:[#allocation7 + $0x758] sm:$0xf] }
  0xfd   :  { %2009 = vmatpush.bf16.msra.mxu3 %v3024_v52  ;;  %2023 = vmatpush.bf16.msrb.mxu0 %v3028_v53  ;;  %v3589_v52 = vld [vmem:[#allocation7 + $0x7d4] sm:$0xf0]  ;;  %v3573_v53 = vld [vmem:[#allocation7 + $0x75c] sm:$0xf]  ;;  %v3292_v58 = vor.u32 %v3572_v47, %v3289_v48  ;;  %v3412_v48 = vld [vmem:[#allocation7 + $0x254] sm:$0xf] }
  0xfe   :  { %v3300_v62 = vor.u32 %v3573_v53, %v3297_v54  ;;  %v2657_v53 = vld [vmem:[#allocation7 + $0x2d8] sm:$0xf0]  ;;  %v2648_v54 = vor.u32 %v3428_v45, %v2647_v44  ;;  %v3510_v44 = vld [vmem:[#allocation7 + $0x564] sm:$0xf]  ;;  %v411_v45 = vperm.slane %v3813_v36, 0 }
 0x100   :  { %1982 = vmatpush.bf16.msra.mxu1 %v2888_v60  ;;  %1996 = vmatpush.bf16.msra.mxu2 %v2892_v61  ;;  %v3556_v60 = vld [vmem:[#allocation7 + $0x6cc] sm:$0xf0]  ;;  %v3296_v61 = vor.u32 %v3589_v52, %v3295_v49  ;;  %v2649_v49 = vld [vmem:[#allocation7 + $0x2d0] sm:$0xf0]  ;;  %v3413_v52 = vld [vmem:[#allocation7 + $0x25c] sm:$0xf] }
 0x101   :  { %2010 = vmatpush.bf16.msra.mxu3 %v2896_v0  ;;  %2024 = vmatpush.bf16.msrb.mxu0 %v2900_v1  ;;  %v3161_v0 = vld [vmem:[#allocation7 + $0x6d0] sm:$0xf0]  ;;  %v3167_v1 = vld [vmem:[#allocation7 + $0x658] sm:$0xf]  ;;  %v3160_v5 = vor.u32 %v3556_v60, %v3159_v59  ;;  %v2660_v59 = vor.u32 %v3413_v52, %v2657_v53  ;;  %v3511_v52 = vld [vmem:[#allocation7 + $0x56c] sm:$0xf] }
 0x102   :  { %v3164_v6 = vor.u32 %v3540_v63, %v3161_v0  ;;  %v3380_v60 = vld [vmem:[#allocation7 + $0x154] sm:$0xf]  ;;  %v3397_v63 = vld [vmem:[#allocation7 + $0x1d4] sm:$0xf0]  ;;  %v3381_v0 = vld [vmem:[#allocation7 + $0x15c] sm:$0xf] }
 0x103   :  { %v3057_v53 = vld [vmem:[#allocation7 + $0x5e8] sm:$0xf0] }
 0x104   :  { %1983 = vmatpush.bf16.msra.mxu1 %v2760_v8  ;;  %1997 = vmatpush.bf16.msra.mxu2 %v2764_v9  ;;  %v3524_v8 = vld [vmem:[#allocation7 + $0x5cc] sm:$0xf0]  ;;  %v3168_v9 = vor.u32 %v3557_v2, %v3167_v1  ;;  %v2529_v1 = vld [vmem:[#allocation7 + $0x1d8] sm:$0xf0] }
 0x105   :  { %2011 = vmatpush.bf16.msra.mxu3 %v2768_v12  ;;  %2025 = vmatpush.bf16.msrb.mxu0 %v2772_v13  ;;  %v3033_v12 = vld [vmem:[#allocation7 + $0x5d0] sm:$0xf0]  ;;  %v3039_v13 = vld [vmem:[#allocation7 + $0x558] sm:$0xf]  ;;  %v3032_v17 = vor.u32 %v3524_v8, %v3031_v7  ;;  %v2391_v2 = vld [vmem:[#allocation7 + $0x50] sm:$0xf] }
 0x106   :  { %v3036_v18 = vor.u32 %v3508_v11, %v3033_v12  ;;  %v2393_v7 = vld [vmem:[#allocation7 + $0xd0] sm:$0xf0]  ;;  %v3365_v11 = vld [vmem:[#allocation7 + $0xd4] sm:$0xf0]  ;;  %v3349_v12 = vld [vmem:[#allocation7 + $0x5c] sm:$0xf] }
 0x108   :  { %1984 = vmatpush.bf16.msra.mxu1 %v2632_v21  ;;  %1998 = vmatpush.bf16.msra.mxu2 %v2636_v22  ;;  %v3492_v21 = vld [vmem:[#allocation7 + $0x4cc] sm:$0xf0]  ;;  %v3040_v22 = vor.u32 %v3525_v14, %v3039_v13  ;;  %v2401_v13 = vld [vmem:[#allocation7 + $0xd8] sm:$0xf0]  ;;  %v3303_v14 = vld [vmem:[#allocation7 + $0x760] sm:$0xf] }
 0x109   :  { %2012 = vmatpush.bf16.msra.mxu3 %v2640_v25  ;;  %2026 = vmatpush.bf16.msrb.mxu0 %v2644_v26  ;;  %v2905_v25 = vld [vmem:[#allocation7 + $0x4d0] sm:$0xf0]  ;;  %v2911_v26 = vld [vmem:[#allocation7 + $0x458] sm:$0xf]  ;;  %v2904_v30 = vor.u32 %v3492_v21, %v2903_v19 }
 0x10a   :  { %v2908_v31 = vor.u32 %v3476_v24, %v2905_v25  ;;  %v3313_v24 = vld [vmem:[#allocation7 + $0x7e8] sm:$0xf0] }
 0x10c   :  { %1985 = vmatpush.bf16.msra.mxu1 %v2504_v34  ;;  %1999 = vmatpush.bf16.msra.mxu2 %v2508_v35  ;;  %v2912_v34 = vor.u32 %v3493_v27, %v2911_v26  ;;  %v2916_v35 = vor.u32 %v3477_v28, %v2913_v29  ;;  %v2404_v26 = vor.u32 %v3349_v12, %v2401_v13  ;;  %v3175_v29 = vld [vmem:[#allocation7 + $0x660] sm:$0xf] }
 0x10d   :  { %2013 = vmatpush.bf16.msra.mxu3 %v2512_v39  ;;  %2027 = vmatpush.bf16.msrb.mxu0 %v2516_v40  ;;  %v3461_v39 = vld [vmem:[#allocation7 + $0x3d4] sm:$0xf0]  ;;  %v3445_v40 = vld [vmem:[#allocation7 + $0x35c] sm:$0xf]  ;;  %v3304_v27 = vor.u32 %v3590_v15, %v3303_v14  ;;  %v3446_v15 = vld [vmem:[#allocation7 + $0x364] sm:$0xf] }
 0x10e   :  { %v2784_v46 = vor.u32 %v3461_v39, %v2783_v38  ;;  %v2788_v47 = vor.u32 %v3445_v40, %v2785_v41  ;;  %v3543_v38 = vld [vmem:[#allocation7 + $0x66c] sm:$0xf]  ;;  %v3047_v40 = vld [vmem:[#allocation7 + $0x560] sm:$0xf] }
 0x10f   :  { %v3185_v39 = vld [vmem:[#allocation7 + $0x6e8] sm:$0xf0] }
 0x110   :  { %1986 = vmatpush.bf16.msra.mxu1 %v2376_v50  ;;  %2000 = vmatpush.bf16.msra.mxu2 %v2380_v51  ;;  %v2655_v50 = vld [vmem:[#allocation7 + $0x258] sm:$0xf] }
 0x111   :  { %2014 = vmatpush.bf16.msra.mxu3 %v2384_v55  ;;  %2028 = vmatpush.bf16.msrb.mxu0 %v2388_v56  ;;  %v3429_v51 = vld [vmem:[#allocation7 + $0x2d4] sm:$0xf0]  ;;  %v2652_v55 = vor.u32 %v3412_v48, %v2649_v49  ;;  %v2519_v56 = vld [vmem:[#allocation7 + $0x150] sm:$0xf]  ;;  %v3049_v48 = vld [vmem:[#allocation7 + $0x5e0] sm:$0xf0] }
 0x112   :  { %v3055_v49 = vld [vmem:[#allocation7 + $0x568] sm:$0xf] }
 0x113   :  { %1987 = vmatmul.bf16.vlgmr.msra.gmra.mxu1 %v3791_v20  ;;  %2001 = vmatmul.bf16.vlgmr.msra.gmra.mxu2 %v3791_v20 }
 0x114   :  { %2035 = vmatpush.bf16.msrb.mxu1 %v3288_v57  ;;  %2049 = vmatpush.bf16.msrb.mxu2 %v3292_v58  ;;  %v3396_v57 = vld [vmem:[#allocation7 + $0x1cc] sm:$0xf0]  ;;  %v2656_v58 = vor.u32 %v3429_v51, %v2655_v50  ;;  %v414_v50 = vperm.slane %v3813_v36, 3  ;;  %v3527_v51 = vld [vmem:[#allocation7 + $0x5e4] sm:$0xf0] }
 0x115   :  { %2063 = vmatpush.bf16.msrb.mxu3 %v3296_v61  ;;  %2077 = vmatpush.bf16.msra.mxu0 %v3300_v62  ;;  %v2521_v61 = vld [vmem:[#allocation7 + $0x1d0] sm:$0xf0]  ;;  %v2527_v62 = vld [vmem:[#allocation7 + $0x158] sm:$0xf]  ;;  %v2520_v3 = vor.u32 %v3396_v57, %v2519_v56  ;;  %v3052_v56 = vor.u32 %v3510_v44, %v3049_v48 }
 0x116   :  { %2015 = vmatmul.bf16.vlgmr.msra.gmra.mxu3 %v3791_v20  ;;  %2029 = vmatmul.bf16.vlgmr.msrb.gmra.mxu0 %v3791_v20  ;;  %v2524_v4 = vor.u32 %v3380_v60, %v2521_v61  ;;  %v2528_v8 = vor.u32 %v3397_v63, %v2527_v62  ;;  %v3494_v60 = vld [vmem:[#allocation7 + $0x4dc] sm:$0xf0]  ;;  %v3478_v61 = vld [vmem:[#allocation7 + $0x464] sm:$0xf]  ;;  %v3056_v62 = vor.u32 %v3527_v51, %v3055_v49 }
 0x117   :  { %v3060_v63 = vor.u32 %v3511_v52, %v3057_v53  ;;  %v2537_v51 = vld [vmem:[#allocation7 + $0x1e0] sm:$0xf0]  ;;  %v2543_v52 = vld [vmem:[#allocation7 + $0x168] sm:$0xf]  ;;  %v418_v53 = vperm.slane %v3813_v36, 7 }
 0x118   :  { %2036 = vmatpush.bf16.msrb.mxu1 %v3160_v5  ;;  %2050 = vmatpush.bf16.msrb.mxu2 %v3164_v6  ;;  %v3364_v5 = vld [vmem:[#allocation7 + $0xcc] sm:$0xf0]  ;;  %v3348_v6 = vld [vmem:[#allocation7 + $0x54] sm:$0xf] }
 0x119   :  { %2064 = vmatpush.bf16.msrb.mxu3 %v3168_v9  ;;  %2078 = vmatpush.bf16.msra.mxu0 %v3172_v10  ;;  %v2532_v9 = vor.u32 %v3381_v0, %v2529_v1  ;;  %v2399_v10 = vld [vmem:[#allocation7 + $0x58] sm:$0xf]  ;;  %v2392_v19 = vor.u32 %v3364_v5, %v2391_v2  ;;  %v2396_v21 = vor.u32 %v3348_v6, %v2393_v7  ;;  %v2921_v1 = vld [vmem:[#allocation7 + $0x4e0] sm:$0xf0]  ;;  %v2927_v2 = vld [vmem:[#allocation7 + $0x468] sm:$0xf] }
 0x11a   :  { %v2400_v25 = vor.u32 %v3365_v11, %v2399_v10  ;;  %v2929_v5 = vld [vmem:[#allocation7 + $0x4e8] sm:$0xf0]  ;;  %v412_v6 = vperm.slane %v3813_v36, 1  ;;  %v413_v7 = vperm.slane %v3813_v36, 2  ;;  %v2791_v10 = vld [vmem:[#allocation7 + $0x360] sm:$0xf] }
 0x11b   :  { %v3462_v11 = vld [vmem:[#allocation7 + $0x3dc] sm:$0xf0] }
 0x11c   :  { %2037 = vmatpush.bf16.msrb.mxu1 %v3032_v17  ;;  %2051 = vmatpush.bf16.msrb.mxu2 %v3036_v18  ;;  %v3305_v17 = vld [vmem:[#allocation7 + $0x7e0] sm:$0xf0]  ;;  %v3311_v18 = vld [vmem:[#allocation7 + $0x768] sm:$0xf] }
 0x11d   :  { %2065 = vmatpush.bf16.msrb.mxu3 %v3040_v22  ;;  %2079 = vmatpush.bf16.msra.mxu0 %v3044_v23  ;;  %v3591_v22 = vld [vmem:[#allocation7 + $0x7e4] sm:$0xf0]  ;;  %v3575_v23 = vld [vmem:[#allocation7 + $0x76c] sm:$0xf]  ;;  %v3308_v28 = vor.u32 %v3574_v16, %v3305_v17  ;;  %v2793_v16 = vld [vmem:[#allocation7 + $0x3e0] sm:$0xf0] }
 0x11e   :  { %v3312_v32 = vor.u32 %v3591_v22, %v3311_v18  ;;  %v3316_v33 = vor.u32 %v3575_v23, %v3313_v24  ;;  %v2799_v17 = vld [vmem:[#allocation7 + $0x368] sm:$0xf]  ;;  %v3447_v22 = vld [vmem:[#allocation7 + $0x36c] sm:$0xf] }
 0x11f   :  { %v2801_v23 = vld [vmem:[#allocation7 + $0x3e8] sm:$0xf0] }
 0x120   :  { %2038 = vmatpush.bf16.msrb.mxu1 %v2904_v30  ;;  %2052 = vmatpush.bf16.msrb.mxu2 %v2908_v31  ;;  %v3558_v30 = vld [vmem:[#allocation7 + $0x6dc] sm:$0xf0]  ;;  %v3542_v31 = vld [vmem:[#allocation7 + $0x664] sm:$0xf] }
 0x121   :  { %2066 = vmatpush.bf16.msrb.mxu3 %v2912_v34  ;;  %2080 = vmatpush.bf16.msra.mxu0 %v2916_v35  ;;  %v3177_v34 = vld [vmem:[#allocation7 + $0x6e0] sm:$0xf0]  ;;  %v3183_v35 = vld [vmem:[#allocation7 + $0x668] sm:$0xf]  ;;  %v3176_v41 = vor.u32 %v3558_v30, %v3175_v29  ;;  %v2796_v29 = vor.u32 %v3446_v15, %v2793_v16  ;;  %v416_v15 = vperm.slane %v3813_v36, 5 }
 0x122   :  { %v3321_v16 = vld [vmem:[#allocation7 + $0x7f0] sm:$0xf0] }
 0x124   :  { %2039 = vmatpush.bf16.msrb.mxu1 %v2776_v42  ;;  %2053 = vmatpush.bf16.msrb.mxu2 %v2780_v43  ;;  %v3180_v42 = vor.u32 %v3542_v31, %v3177_v34  ;;  %v3526_v43 = vld [vmem:[#allocation7 + $0x5dc] sm:$0xf0] }
 0x125   :  { %2067 = vmatpush.bf16.msrb.mxu3 %v2784_v46  ;;  %2081 = vmatpush.bf16.msra.mxu0 %v2788_v47  ;;  %v3184_v46 = vor.u32 %v3559_v37, %v3183_v35  ;;  %v3188_v47 = vor.u32 %v3543_v38, %v3185_v39  ;;  %v2804_v35 = vor.u32 %v3447_v22, %v2801_v23  ;;  %v2671_v38 = vld [vmem:[#allocation7 + $0x268] sm:$0xf]  ;;  %v3593_v22 = vld [vmem:[#allocation7 + $0x7f4] sm:$0xf0]  ;;  %v3577_v23 = vld [vmem:[#allocation7 + $0x77c] sm:$0xf] }
 0x126   :  { %v3431_v39 = vld [vmem:[#allocation7 + $0x2e4] sm:$0xf0] }
 0x127   :  { %v2672_v48 = vor.u32 %v3431_v39, %v2671_v38 }
 0x128   :  { %2040 = vmatpush.bf16.msrb.mxu1 %v2648_v54  ;;  %2054 = vmatpush.bf16.msrb.mxu2 %v2652_v55  ;;  %v3048_v55 = vor.u32 %v3526_v43, %v3047_v40  ;;  %v3415_v40 = vld [vmem:[#allocation7 + $0x26c] sm:$0xf] }
 0x129   :  { %2068 = vmatpush.bf16.msrb.mxu3 %v2656_v58  ;;  %2082 = vmatpush.bf16.msra.mxu0 %v2660_v59  ;;  %v2919_v59 = vld [vmem:[#allocation7 + $0x460] sm:$0xf] }
 0x12c   :  { %2041 = vmatpush.bf16.msrb.mxu1 %v2520_v3  ;;  %2055 = vmatpush.bf16.msrb.mxu2 %v2524_v4  ;;  %v3495_v3 = vld [vmem:[#allocation7 + $0x4e4] sm:$0xf0]  ;;  %v3479_v4 = vld [vmem:[#allocation7 + $0x46c] sm:$0xf] }
 0x12d   :  { %2069 = vmatpush.bf16.msrb.mxu3 %v2528_v8  ;;  %2083 = vmatpush.bf16.msra.mxu0 %v2532_v9  ;;  %v2920_v8 = vor.u32 %v3494_v60, %v2919_v59  ;;  %v2924_v9 = vor.u32 %v3478_v61, %v2921_v1  ;;  %v2928_v12 = vor.u32 %v3495_v3, %v2927_v2  ;;  %v2407_v61 = vld [vmem:[#allocation7 + $0x60] sm:$0xf] }
 0x12e   :  { %v2932_v13 = vor.u32 %v3479_v4, %v2929_v5  ;;  %v2415_v5 = vld [vmem:[#allocation7 + $0x68] sm:$0xf] }
 0x12f   :  { %v1764_v54 = vpop.f32.mrf.mxu1 }
 0x130   :  { %2042 = vmatpush.bf16.msrb.mxu1 %v2392_v19  ;;  %2056 = vmatpush.bf16.msrb.mxu2 %v2396_v21  ;;  %v1765_v57 = vadd.f32 %v1764_v54, %v411_v45  ;;  %v1806_v58 = vpop.f32.mrf.mxu0  ;;  %v3463_v21 = vld [vmem:[#allocation7 + $0x3e4] sm:$0xf0] }
 0x131   :  { %2070 = vmatpush.bf16.msrb.mxu3 %v2400_v25  ;;  %2084 = vmatpush.bf16.msra.mxu0 %v2404_v26  ;;  %v1807_v0 = vadd.f32 %v1806_v58, %v414_v50  ;;  %v2663_v26 = vld [vmem:[#allocation7 + $0x260] sm:$0xf]  ;;  %v2800_v34 = vor.u32 %v3463_v21, %v2799_v17  ;;  %v2545_v58 = vld [vmem:[#allocation7 + $0x1e8] sm:$0xf0]  ;;  %v3327_v17 = vld [vmem:[#allocation7 + $0x778] sm:$0xf] }
 0x132   :  { %2203 = vst [vmem:[#allocation10] sm:$0xff] %v1765_v57  ;;  %v3383_v57 = vld [vmem:[#allocation7 + $0x16c] sm:$0xf] }
 0x133   :  { %2043 = vmatmul.bf16.vlgmr.msrb.gmra.mxu1 %v3791_v20  ;;  %2057 = vmatmul.bf16.vlgmr.msrb.gmra.mxu2 %v3791_v20  ;;  %2206 = vst [vmem:[#allocation10 + $0x18] sm:$0xff] %v1807_v0  ;;  %v2409_v0 = vld [vmem:[#allocation7 + $0xe0] sm:$0xf0] }
 0x134   :  { %2091 = vmatpush.bf16.msra.mxu1 %v3304_v27  ;;  %2105 = vmatpush.bf16.msra.mxu2 %v3308_v28  ;;  %v3430_v27 = vld [vmem:[#allocation7 + $0x2dc] sm:$0xf0]  ;;  %v2792_v28 = vor.u32 %v3462_v11, %v2791_v10  ;;  %v2417_v11 = vld [vmem:[#allocation7 + $0xe8] sm:$0xf0] }
 0x135   :  { %2119 = vmatpush.bf16.msra.mxu3 %v3312_v32  ;;  %2133 = vmatpush.bf16.msrb.mxu0 %v3316_v33  ;;  %v1778_v14 = vpop.f32.mrf.mxu2  ;;  %v3414_v32 = vld [vmem:[#allocation7 + $0x264] sm:$0xf]  ;;  %v2664_v43 = vor.u32 %v3430_v27, %v2663_v26 }
 0x136   :  { %2071 = vmatmul.bf16.vlgmr.msrb.gmra.mxu3 %v3791_v20  ;;  %2085 = vmatmul.bf16.vlgmr.msra.gmra.mxu0 %v3791_v20  ;;  %v1779_v18 = vadd.f32 %v1778_v14, %v412_v6  ;;  %v1792_v19 = vpop.f32.mrf.mxu3  ;;  %v2665_v33 = vld [vmem:[#allocation7 + $0x2e0] sm:$0xf0]  ;;  %v3576_v14 = vld [vmem:[#allocation7 + $0x774] sm:$0xf] }
 0x137   :  { %v1793_v24 = vadd.f32 %v1792_v19, %v413_v7  ;;  %v1766_v25 = vpop.f32.mrf.mxu1  ;;  %v2668_v44 = vor.u32 %v3414_v32, %v2665_v33  ;;  %v3191_v32 = vld [vmem:[#allocation7 + $0x670] sm:$0xf] }
 0x138   :  { %2092 = vmatpush.bf16.msra.mxu1 %v3176_v41  ;;  %2106 = vmatpush.bf16.msra.mxu2 %v3180_v42  ;;  %2204 = vst [vmem:[#allocation10 + $0x8] sm:$0xff] %v1779_v18  ;;  %v1767_v30 = vadd.f32 %v1766_v25, %v411_v45  ;;  %v1808_v31 = vpop.f32.mrf.mxu0  ;;  %v2673_v41 = vld [vmem:[#allocation7 + $0x2e8] sm:$0xf0]  ;;  %v2535_v42 = vld [vmem:[#allocation7 + $0x160] sm:$0xf]  ;;  %v417_v18 = vperm.slane %v3813_v36, 6 }
 0x139   :  { %2120 = vmatpush.bf16.msra.mxu3 %v3184_v46  ;;  %2134 = vmatpush.bf16.msrb.mxu0 %v3188_v47  ;;  %2205 = vst [vmem:[#allocation10 + $0x10] sm:$0xff] %v1793_v24  ;;  %v1809_v37 = vadd.f32 %v1808_v31, %v414_v50  ;;  %v3398_v45 = vld [vmem:[#allocation7 + $0x1dc] sm:$0xf0]  ;;  %v3382_v46 = vld [vmem:[#allocation7 + $0x164] sm:$0xf]  ;;  %v415_v47 = vperm.slane %v3813_v36, 4  ;;  %v2676_v49 = vor.u32 %v3415_v40, %v2673_v41 }
 0x13a   :  { %2235 = vst [vmem:[#allocation10 + $0x100] sm:$0xff] %v1767_v30  ;;  %v2536_v1 = vor.u32 %v3398_v45, %v2535_v42  ;;  %v2540_v2 = vor.u32 %v3382_v46, %v2537_v51  ;;  %v3329_v24 = vld [vmem:[#allocation7 + $0x7f8] sm:$0xf0]  ;;  %v3560_v33 = vld [vmem:[#allocation7 + $0x6ec] sm:$0xf0] }
 0x13b   :  { %2238 = vst [vmem:[#allocation10 + $0x118] sm:$0xff] %v1809_v37  ;;  %v3332_v37 = vor.u32 %v3577_v23, %v3329_v24  ;;  %v3193_v40 = vld [vmem:[#allocation7 + $0x6f0] sm:$0xf0]  ;;  %v3199_v41 = vld [vmem:[#allocation7 + $0x678] sm:$0xf] }
 0x13c   :  { %2093 = vmatpush.bf16.msra.mxu1 %v3048_v55  ;;  %2107 = vmatpush.bf16.msra.mxu2 %v3052_v56  ;;  %v3399_v56 = vld [vmem:[#allocation7 + $0x1e4] sm:$0xf0]  ;;  %v3561_v42 = vld [vmem:[#allocation7 + $0x6f4] sm:$0xf0]  ;;  %v3545_v45 = vld [vmem:[#allocation7 + $0x67c] sm:$0xf] }
 0x13d   :  { %2121 = vmatpush.bf16.msra.mxu3 %v3056_v62  ;;  %2135 = vmatpush.bf16.msrb.mxu0 %v3060_v63  ;;  %v1780_v50 = vpop.f32.mrf.mxu2  ;;  %v3366_v62 = vld [vmem:[#allocation7 + $0xdc] sm:$0xf0]  ;;  %v3350_v63 = vld [vmem:[#allocation7 + $0x64] sm:$0xf]  ;;  %v3201_v46 = vld [vmem:[#allocation7 + $0x6f8] sm:$0xf0] }
 0x13e   :  { %v1781_v54 = vadd.f32 %v1780_v50, %v412_v6  ;;  %v1794_v55 = vpop.f32.mrf.mxu3  ;;  %v3367_v6 = vld [vmem:[#allocation7 + $0xe4] sm:$0xf0]  ;;  %v2408_v19 = vor.u32 %v3366_v62, %v2407_v61  ;;  %v2412_v21 = vor.u32 %v3350_v63, %v2409_v0  ;;  %v3192_v50 = vor.u32 %v3560_v33, %v3191_v32  ;;  %v3464_v23 = vld [vmem:[#allocation7 + $0x3ec] sm:$0xf0]  ;;  %v3448_v36 = vld [vmem:[#allocation7 + $0x374] sm:$0xf] }
 0x13f   :  { %v1795_v59 = vadd.f32 %v1794_v55, %v413_v7  ;;  %v1820_v60 = vpop.f32.mrf.mxu1  ;;  %v2544_v7 = vor.u32 %v3399_v56, %v2543_v52  ;;  %v2416_v25 = vor.u32 %v3367_v6, %v2415_v5  ;;  %v3528_v52 = vld [vmem:[#allocation7 + $0x5ec] sm:$0xf0]  ;;  %v3855_v55 = vld [vmem:[#allocation8 + $0x8] sm:$0xff]  ;;  %v3204_v56 = vor.u32 %v3545_v45, %v3201_v46  ;;  %v3480_v6 = vld [vmem:[#allocation7 + $0x474] sm:$0xf] }
 0x140   :  { %2094 = vmatpush.bf16.msra.mxu1 %v2920_v8  ;;  %2108 = vmatpush.bf16.msra.mxu2 %v2924_v9  ;;  %2236 = vst [vmem:[#allocation10 + $0x108] sm:$0xff] %v1781_v54  ;;  %v1821_v3 = vadd.f32 %v1820_v60, %v415_v47  ;;  %v1862_v4 = vpop.f32.mrf.mxu0  ;;  %v3351_v8 = vld [vmem:[#allocation7 + $0x6c] sm:$0xf]  ;;  %v2548_v9 = vor.u32 %v3383_v57, %v2545_v58  ;;  %v3512_v54 = vld [vmem:[#allocation7 + $0x574] sm:$0xf]  ;;  %v419_v62 = vperm.slane %v3855_v55, 0 }
 0x141   :  { %2122 = vmatpush.bf16.msra.mxu3 %v2928_v12  ;;  %2136 = vmatpush.bf16.msrb.mxu0 %v2932_v13  ;;  %2237 = vst [vmem:[#allocation10 + $0x110] sm:$0xff] %v1795_v59  ;;  %v1863_v10 = vadd.f32 %v1862_v4, %v418_v53  ;;  %v3319_v12 = vld [vmem:[#allocation7 + $0x770] sm:$0xf]  ;;  %v2420_v26 = vor.u32 %v3351_v8, %v2417_v11  ;;  %v3065_v57 = vld [vmem:[#allocation7 + $0x5f0] sm:$0xf0]  ;;  %v422_v63 = vperm.slane %v3855_v55, 3 }
 0x142   :  { %2207 = vst [vmem:[#allocation10 + $0x20] sm:$0xff] %v1821_v3  ;;  %v3592_v13 = vld [vmem:[#allocation7 + $0x7ec] sm:$0xf0]  ;;  %v3071_v58 = vld [vmem:[#allocation7 + $0x578] sm:$0xf]  ;;  %v421_v32 = vperm.slane %v3855_v55, 2 }
 0x143   :  { %2210 = vst [vmem:[#allocation10 + $0x38] sm:$0xff] %v1863_v10  ;;  %v3513_v59 = vld [vmem:[#allocation7 + $0x57c] sm:$0xf]  ;;  %v2935_v4 = vld [vmem:[#allocation7 + $0x470] sm:$0xf] }
 0x144   :  { %2095 = vmatpush.bf16.msra.mxu1 %v2792_v28  ;;  %2109 = vmatpush.bf16.msra.mxu2 %v2796_v29  ;;  %v3320_v28 = vor.u32 %v3592_v13, %v3319_v12  ;;  %v3324_v29 = vor.u32 %v3576_v14, %v3321_v16  ;;  %v3073_v60 = vld [vmem:[#allocation7 + $0x5f8] sm:$0xf0]  ;;  %v3496_v5 = vld [vmem:[#allocation7 + $0x4ec] sm:$0xf0]  ;;  %v2937_v10 = vld [vmem:[#allocation7 + $0x4f0] sm:$0xf0] }
 0x145   :  { %2123 = vmatpush.bf16.msra.mxu3 %v2800_v34  ;;  %2137 = vmatpush.bf16.msrb.mxu0 %v2804_v35  ;;  %v1834_v27 = vpop.f32.mrf.mxu2  ;;  %v3544_v34 = vld [vmem:[#allocation7 + $0x674] sm:$0xf]  ;;  %v3328_v35 = vor.u32 %v3593_v22, %v3327_v17  ;;  %v2943_v11 = vld [vmem:[#allocation7 + $0x478] sm:$0xf]  ;;  %v3481_v13 = vld [vmem:[#allocation7 + $0x47c] sm:$0xf] }
 0x146   :  { %v1835_v30 = vadd.f32 %v1834_v27, %v416_v15  ;;  %v1848_v31 = vpop.f32.mrf.mxu3  ;;  %v3196_v51 = vor.u32 %v3544_v34, %v3193_v40  ;;  %v3497_v12 = vld [vmem:[#allocation7 + $0x4f4] sm:$0xf0]  ;;  %v2945_v14 = vld [vmem:[#allocation7 + $0x4f8] sm:$0xf0]  ;;  %v2807_v22 = vld [vmem:[#allocation7 + $0x370] sm:$0xf] }
 0x147   :  { %v1849_v38 = vadd.f32 %v1848_v31, %v417_v18  ;;  %v1822_v39 = vpop.f32.mrf.mxu1  ;;  %v2944_v24 = vor.u32 %v3497_v12, %v2943_v11  ;;  %v2815_v27 = vld [vmem:[#allocation7 + $0x378] sm:$0xf]  ;;  %v420_v31 = vperm.slane %v3855_v55, 1  ;;  %v2808_v33 = vor.u32 %v3464_v23, %v2807_v22  ;;  %v2425_v11 = vld [vmem:[#allocation7 + $0xf0] sm:$0xf0] }
 0x148   :  { %2096 = vmatpush.bf16.msra.mxu1 %v2664_v43  ;;  %2110 = vmatpush.bf16.msra.mxu2 %v2668_v44  ;;  %2208 = vst [vmem:[#allocation10 + $0x28] sm:$0xff] %v1835_v30  ;;  %v1823_v43 = vadd.f32 %v1822_v39, %v415_v47  ;;  %v1864_v44 = vpop.f32.mrf.mxu0  ;;  %v3200_v47 = vor.u32 %v3561_v42, %v3199_v41  ;;  %v2817_v30 = vld [vmem:[#allocation7 + $0x3f8] sm:$0xf0]  ;;  %v3416_v41 = vld [vmem:[#allocation7 + $0x274] sm:$0xf] }
 0x149   :  { %2124 = vmatpush.bf16.msra.mxu3 %v2672_v48  ;;  %2138 = vmatpush.bf16.msrb.mxu0 %v2676_v49  ;;  %2209 = vst [vmem:[#allocation10 + $0x30] sm:$0xff] %v1849_v38  ;;  %v1865_v48 = vadd.f32 %v1864_v44, %v418_v53  ;;  %v3063_v49 = vld [vmem:[#allocation7 + $0x570] sm:$0xf]  ;;  %v3529_v53 = vld [vmem:[#allocation7 + $0x5f4] sm:$0xf0] }
 0x14a   :  { %2239 = vst [vmem:[#allocation10 + $0x120] sm:$0xff] %v1823_v43  ;;  %v3064_v0 = vor.u32 %v3528_v52, %v3063_v49  ;;  %v3072_v8 = vor.u32 %v3529_v53, %v3071_v58  ;;  %v2681_v42 = vld [vmem:[#allocation7 + $0x2f0] sm:$0xf0]  ;;  %v2687_v43 = vld [vmem:[#allocation7 + $0x278] sm:$0xf] }
 0x14b   :  { %2242 = vst [vmem:[#allocation10 + $0x138] sm:$0xff] %v1865_v48  ;;  %v3433_v46 = vld [vmem:[#allocation7 + $0x2f4] sm:$0xf0]  ;;  %v3417_v48 = vld [vmem:[#allocation7 + $0x27c] sm:$0xf]  ;;  %v2684_v58 = vor.u32 %v3416_v41, %v2681_v42 }
 0x14c   :  { %2097 = vmatpush.bf16.msra.mxu1 %v2536_v1  ;;  %2111 = vmatpush.bf16.msra.mxu2 %v2540_v2  ;;  %v3068_v1 = vor.u32 %v3512_v54, %v3065_v57  ;;  %v2689_v49 = vld [vmem:[#allocation7 + $0x2f8] sm:$0xf0]  ;;  %v2551_v52 = vld [vmem:[#allocation7 + $0x170] sm:$0xf]  ;;  %v3384_v53 = vld [vmem:[#allocation7 + $0x174] sm:$0xf] }
 0x14d   :  { %2125 = vmatpush.bf16.msra.mxu3 %v2544_v7  ;;  %2139 = vmatpush.bf16.msrb.mxu0 %v2548_v9  ;;  %v1836_v61 = vpop.f32.mrf.mxu2  ;;  %v3076_v7 = vor.u32 %v3513_v59, %v3073_v60  ;;  %v3400_v54 = vld [vmem:[#allocation7 + $0x1ec] sm:$0xf0]  ;;  %v2553_v59 = vld [vmem:[#allocation7 + $0x1f0] sm:$0xf0]  ;;  %v2431_v12 = vld [vmem:[#allocation7 + $0x78] sm:$0xf] }
 0x14e   :  { %v1837_v2 = vadd.f32 %v1836_v61, %v416_v15  ;;  %v1850_v3 = vpop.f32.mrf.mxu3  ;;  %v2688_v61 = vor.u32 %v3433_v46, %v2687_v43  ;;  %v405_v43 = vld [vmem:[#allocation8 + $0x10] sm:$0xff] }
 0x14f   :  { %v1851_v9 = vadd.f32 %v1850_v3, %v417_v18  ;;  %v3385_v3 = vld [vmem:[#allocation7 + $0x17c] sm:$0xf] }
 0x150   :  { %2098 = vmatpush.bf16.msra.mxu1 %v2408_v19  ;;  %2112 = vmatpush.bf16.msra.mxu2 %v2412_v21  ;;  %2240 = vst [vmem:[#allocation10 + $0x128] sm:$0xff] %v1837_v2  ;;  %v1876_v16 = vpop.f32.mrf.mxu1  ;;  %v2936_v19 = vor.u32 %v3496_v5, %v2935_v4  ;;  %v2940_v21 = vor.u32 %v3480_v6, %v2937_v10  ;;  %v3401_v2 = vld [vmem:[#allocation7 + $0x1f4] sm:$0xf0]  ;;  %v2561_v4 = vld [vmem:[#allocation7 + $0x1f8] sm:$0xf0] }
 0x151   :  { %2126 = vmatpush.bf16.msra.mxu3 %v2416_v25  ;;  %2140 = vmatpush.bf16.msrb.mxu0 %v2420_v26  ;;  %2241 = vst [vmem:[#allocation10 + $0x130] sm:$0xff] %v1851_v9  ;;  %v1877_v15 = vadd.f32 %v1876_v16, %v419_v62  ;;  %v2948_v25 = vor.u32 %v3481_v13, %v2945_v14  ;;  %v2809_v26 = vld [vmem:[#allocation7 + $0x3f0] sm:$0xf0]  ;;  %v2423_v6 = vld [vmem:[#allocation7 + $0x70] sm:$0xf] }
 0x152   :  { %v2812_v34 = vor.u32 %v3448_v36, %v2809_v26  ;;  %v2556_v5 = vor.u32 %v3384_v53, %v2553_v59  ;;  %v2564_v9 = vor.u32 %v3385_v3, %v2561_v4  ;;  %v3369_v16 = vld [vmem:[#allocation7 + $0xf4] sm:$0xf0]  ;;  %v434_v3 = vperm.slane %v405_v43, 7 }
 0x153   :  { %2099 = vmatmul.bf16.vlgmr.msra.gmra.mxu1 %v3791_v20  ;;  %2113 = vmatmul.bf16.vlgmr.msra.gmra.mxu2 %v3791_v20  ;;  %v1918_v17 = vpop.f32.mrf.mxu0  ;;  %2211 = vst [vmem:[#allocation10 + $0x40] sm:$0xff] %v1877_v15  ;;  %v3353_v15 = vld [vmem:[#allocation7 + $0x7c] sm:$0xf]  ;;  %v2432_v23 = vor.u32 %v3369_v16, %v2431_v12 }
 0x154   :  { %2147 = vmatpush.bf16.msrb.mxu1 %v3320_v28  ;;  %2161 = vmatpush.bf16.msrb.mxu2 %v3324_v29  ;;  %v1919_v18 = vadd.f32 %v1918_v17, %v422_v63  ;;  %v3465_v28 = vld [vmem:[#allocation7 + $0x3f4] sm:$0xf0]  ;;  %v3449_v29 = vld [vmem:[#allocation7 + $0x37c] sm:$0xf] }
 0x155   :  { %2175 = vmatpush.bf16.msrb.mxu3 %v3328_v35  ;;  %2189 = vmatpush.bf16.msra.mxu0 %v3332_v37  ;;  %v2679_v35 = vld [vmem:[#allocation7 + $0x270] sm:$0xf]  ;;  %v2816_v38 = vor.u32 %v3465_v28, %v2815_v27  ;;  %v2820_v39 = vor.u32 %v3449_v29, %v2817_v30  ;;  %v2433_v17 = vld [vmem:[#allocation7 + $0xf8] sm:$0xf0]  ;;  %v424_v29 = vperm.slane %v3855_v55, 5  ;;  %v425_v30 = vperm.slane %v3855_v55, 6 }
 0x156   :  { %2127 = vmatmul.bf16.vlgmr.msra.gmra.mxu3 %v3791_v20  ;;  %2141 = vmatmul.bf16.vlgmr.msrb.gmra.mxu0 %v3791_v20  ;;  %2214 = vst [vmem:[#allocation10 + $0x58] sm:$0xff] %v1919_v18  ;;  %v3432_v37 = vld [vmem:[#allocation7 + $0x2ec] sm:$0xf0]  ;;  %v1890_v40 = vpop.f32.mrf.mxu2  ;;  %v2436_v36 = vor.u32 %v3353_v15, %v2433_v17  ;;  %v423_v18 = vperm.slane %v3855_v55, 4 }
 0x157   :  { %v1891_v44 = vadd.f32 %v1890_v40, %v420_v31  ;;  %v2680_v57 = vor.u32 %v3432_v37, %v2679_v35 }
 0x158   :  { %2148 = vmatpush.bf16.msrb.mxu1 %v3192_v50  ;;  %2162 = vmatpush.bf16.msrb.mxu2 %v3196_v51  ;;  %v1878_v51 = vpop.f32.mrf.mxu1 }
 0x159   :  { %2176 = vmatpush.bf16.msrb.mxu3 %v3200_v47  ;;  %2190 = vmatpush.bf16.msra.mxu0 %v3204_v56  ;;  %v1904_v45 = vpop.f32.mrf.mxu3  ;;  %2212 = vst [vmem:[#allocation10 + $0x48] sm:$0xff] %v1891_v44  ;;  %v1879_v47 = vadd.f32 %v1878_v51, %v419_v62  ;;  %v2552_v62 = vor.u32 %v3400_v54, %v2551_v52  ;;  %v430_v44 = vperm.slane %v405_v43, 3  ;;  %v429_v51 = vperm.slane %v405_v43, 2 }
 0x15a   :  { %v1905_v50 = vadd.f32 %v1904_v45, %v421_v32 }
 0x15b   :  { %v1920_v56 = vpop.f32.mrf.mxu0  ;;  %2243 = vst [vmem:[#allocation10 + $0x140] sm:$0xff] %v1879_v47 }
 0x15c   :  { %2149 = vmatpush.bf16.msrb.mxu1 %v3064_v0  ;;  %2163 = vmatpush.bf16.msrb.mxu2 %v3068_v1  ;;  %2213 = vst [vmem:[#allocation10 + $0x50] sm:$0xff] %v1905_v50  ;;  %v1921_v60 = vadd.f32 %v1920_v56, %v422_v63  ;;  %v2692_v0 = vor.u32 %v3417_v48, %v2689_v49  ;;  %v2559_v1 = vld [vmem:[#allocation7 + $0x178] sm:$0xf]  ;;  %v3352_v63 = vld [vmem:[#allocation7 + $0x74] sm:$0xf]  ;;  %v428_v50 = vperm.slane %v405_v43, 1 }
 0x15d   :  { %2177 = vmatpush.bf16.msrb.mxu3 %v3072_v8  ;;  %2191 = vmatpush.bf16.msra.mxu0 %v3076_v7  ;;  %v3368_v8 = vld [vmem:[#allocation7 + $0xec] sm:$0xf0]  ;;  %v2560_v7 = vor.u32 %v3401_v2, %v2559_v1  ;;  %v2428_v22 = vor.u32 %v3352_v63, %v2425_v11  ;;  %v431_v2 = vperm.slane %v405_v43, 4 }
 0x15e   :  { %2246 = vst [vmem:[#allocation10 + $0x158] sm:$0xff] %v1921_v60  ;;  %v1892_v10 = vpop.f32.mrf.mxu2 }
 0x15f   :  { %v1893_v13 = vadd.f32 %v1892_v10, %v420_v31 }
 0x160   :  { %2150 = vmatpush.bf16.msrb.mxu1 %v2936_v19  ;;  %2164 = vmatpush.bf16.msrb.mxu2 %v2940_v21  ;;  %v2424_v21 = vor.u32 %v3368_v8, %v2423_v6  ;;  %v432_v8 = vperm.slane %v405_v43, 5 }
 0x161   :  { %2178 = vmatpush.bf16.msrb.mxu3 %v2944_v24  ;;  %2192 = vmatpush.bf16.msra.mxu0 %v2948_v25  ;;  %v1906_v14 = vpop.f32.mrf.mxu3  ;;  %2244 = vst [vmem:[#allocation10 + $0x148] sm:$0xff] %v1893_v13  ;;  %v426_v24 = vperm.slane %v3855_v55, 7  ;;  %v427_v55 = vperm.slane %v405_v43, 0 }
 0x162   :  { %v1907_v19 = vadd.f32 %v1906_v14, %v421_v32 }
 0x164   :  { %2151 = vmatpush.bf16.msrb.mxu1 %v2808_v33  ;;  %2165 = vmatpush.bf16.msrb.mxu2 %v2812_v34  ;;  %2245 = vst [vmem:[#allocation10 + $0x150] sm:$0xff] %v1907_v19 }
 0x165   :  { %2179 = vmatpush.bf16.msrb.mxu3 %v2816_v38  ;;  %2193 = vmatpush.bf16.msra.mxu0 %v2820_v39 }
 0x168   :  { %2152 = vmatpush.bf16.msrb.mxu1 %v2680_v57  ;;  %2166 = vmatpush.bf16.msrb.mxu2 %v2684_v58 }
 0x169   :  { %2180 = vmatpush.bf16.msrb.mxu3 %v2688_v61  ;;  %2194 = vmatpush.bf16.msra.mxu0 %v2692_v0 }
 0x16c   :  { %2153 = vmatpush.bf16.msrb.mxu1 %v2552_v62  ;;  %2167 = vmatpush.bf16.msrb.mxu2 %v2556_v5 }
 0x16d   :  { %2181 = vmatpush.bf16.msrb.mxu3 %v2560_v7  ;;  %2195 = vmatpush.bf16.msra.mxu0 %v2564_v9  ;;  %v433_v7 = vperm.slane %v405_v43, 6 }
 0x170   :  { %2154 = vmatpush.bf16.msrb.mxu1 %v2424_v21  ;;  %2168 = vmatpush.bf16.msrb.mxu2 %v2428_v22  ;;  %v1932_v25 = vpop.f32.mrf.mxu1  ;;  %v406_v22 = vld [vmem:[#allocation8 + $0x18] sm:$0xff] }
 0x171   :  { %2182 = vmatpush.bf16.msrb.mxu3 %v2432_v23  ;;  %2196 = vmatpush.bf16.msra.mxu0 %v2436_v36  ;;  %v1933_v26 = vadd.f32 %v1932_v25, %v423_v18  ;;  %v435_v23 = vperm.slane %v406_v22, 0  ;;  %v438_v36 = vperm.slane %v406_v22, 3 }
 0x173   :  { %2155 = vmatmul.bf16.vlgmr.msrb.gmra.mxu1 %v3791_v20  ;;  %2169 = vmatmul.bf16.vlgmr.msrb.gmra.mxu2 %v3791_v20  ;;  %v1974_v27 = vpop.f32.mrf.mxu0  ;;  %2215 = vst [vmem:[#allocation10 + $0x60] sm:$0xff] %v1933_v26 }
 0x174   :  { %2183 = vmatmul.bf16.vlgmr.msrb.gmra.mxu3 %v3791_v20  ;;  %2197 = vmatmul.bf16.vlgmr.msra.gmra.mxu0 %v3791_v20  ;;  %v1975_v28 = vadd.f32 %v1974_v27, %v426_v24  ;;  %v436_v27 = vperm.slane %v406_v22, 1 }
 0x176   :  { %2218 = vst [vmem:[#allocation10 + $0x78] sm:$0xff] %v1975_v28  ;;  %v1946_v31 = vpop.f32.mrf.mxu2  ;;  %v437_v28 = vperm.slane %v406_v22, 2 }
 0x177   :  { %v1947_v32 = vadd.f32 %v1946_v31, %v424_v29 }
 0x178   :  { %v1934_v35 = vpop.f32.mrf.mxu1 }
 0x179   :  { %v1960_v33 = vpop.f32.mrf.mxu3  ;;  %2216 = vst [vmem:[#allocation10 + $0x68] sm:$0xff] %v1947_v32  ;;  %v1935_v20 = vadd.f32 %v1934_v35, %v423_v18 }
 0x17a   :  { %v1961_v34 = vadd.f32 %v1960_v33, %v425_v30 }
 0x17b   :  { %v1976_v37 = vpop.f32.mrf.mxu0  ;;  %2247 = vst [vmem:[#allocation10 + $0x160] sm:$0xff] %v1935_v20 }
 0x17c   :  { %2217 = vst [vmem:[#allocation10 + $0x70] sm:$0xff] %v1961_v34  ;;  %v1977_v38 = vadd.f32 %v1976_v37, %v426_v24 }
 0x17e   :  { %2250 = vst [vmem:[#allocation10 + $0x178] sm:$0xff] %v1977_v38  ;;  %v1948_v39 = vpop.f32.mrf.mxu2 }
 0x17f   :  { %v1949_v40 = vadd.f32 %v1948_v39, %v424_v29 }
 0x181   :  { %v1962_v41 = vpop.f32.mrf.mxu3  ;;  %2248 = vst [vmem:[#allocation10 + $0x168] sm:$0xff] %v1949_v40 }
 0x182   :  { %v1963_v42 = vadd.f32 %v1962_v41, %v425_v30  ;;  %v439_v41 = vperm.slane %v406_v22, 4 }
 0x184   :  { %2249 = vst [vmem:[#allocation10 + $0x170] sm:$0xff] %v1963_v42  ;;  %v442_v42 = vperm.slane %v406_v22, 7 }
 0x190   :  { %v1988_v45 = vpop.f32.mrf.mxu1 }
 0x191   :  { %v1989_v46 = vadd.f32 %v1988_v45, %v427_v55 }
 0x193   :  { %v2030_v48 = vpop.f32.mrf.mxu0  ;;  %2219 = vst [vmem:[#allocation10 + $0x80] sm:$0xff] %v1989_v46  ;;  %v440_v46 = vperm.slane %v406_v22, 5 }
 0x194   :  { %v2031_v49 = vadd.f32 %v2030_v48, %v430_v44  ;;  %v441_v48 = vperm.slane %v406_v22, 6 }
 0x196   :  { %2222 = vst [vmem:[#allocation10 + $0x98] sm:$0xff] %v2031_v49  ;;  %v2002_v52 = vpop.f32.mrf.mxu2 }
 0x197   :  { %v2003_v54 = vadd.f32 %v2002_v52, %v428_v50 }
 0x198   :  { %v1990_v57 = vpop.f32.mrf.mxu1 }
 0x199   :  { %v2016_v47 = vpop.f32.mrf.mxu3  ;;  %2220 = vst [vmem:[#allocation10 + $0x88] sm:$0xff] %v2003_v54  ;;  %v1991_v58 = vadd.f32 %v1990_v57, %v427_v55 }
 0x19a   :  { %v2017_v56 = vadd.f32 %v2016_v47, %v429_v51 }
 0x19b   :  { %v2032_v53 = vpop.f32.mrf.mxu0  ;;  %2251 = vst [vmem:[#allocation10 + $0x180] sm:$0xff] %v1991_v58 }
 0x19c   :  { %2221 = vst [vmem:[#allocation10 + $0x90] sm:$0xff] %v2017_v56  ;;  %v2033_v59 = vadd.f32 %v2032_v53, %v430_v44 }
 0x19e   :  { %2254 = vst [vmem:[#allocation10 + $0x198] sm:$0xff] %v2033_v59  ;;  %v2004_v60 = vpop.f32.mrf.mxu2 }
 0x19f   :  { %v2005_v61 = vadd.f32 %v2004_v60, %v428_v50 }
 0x1a1   :  { %v2018_v0 = vpop.f32.mrf.mxu3  ;;  %2252 = vst [vmem:[#allocation10 + $0x188] sm:$0xff] %v2005_v61 }
 0x1a2   :  { %v2019_v1 = vadd.f32 %v2018_v0, %v429_v51 }
 0x1a4   :  { %2253 = vst [vmem:[#allocation10 + $0x190] sm:$0xff] %v2019_v1 }
 0x1b0   :  { %v2044_v4 = vpop.f32.mrf.mxu1 }
 0x1b1   :  { %v2045_v62 = vadd.f32 %v2044_v4, %v431_v2 }
 0x1b3   :  { %v2086_v5 = vpop.f32.mrf.mxu0  ;;  %2223 = vst [vmem:[#allocation10 + $0xa0] sm:$0xff] %v2045_v62 }
 0x1b4   :  { %v2087_v6 = vadd.f32 %v2086_v5, %v434_v3 }
 0x1b6   :  { %2226 = vst [vmem:[#allocation10 + $0xb8] sm:$0xff] %v2087_v6  ;;  %v2058_v9 = vpop.f32.mrf.mxu2 }
 0x1b7   :  { %v2059_v10 = vadd.f32 %v2058_v9, %v432_v8 }
 0x1b8   :  { %v2046_v12 = vpop.f32.mrf.mxu1 }
 0x1b9   :  { %v2072_v63 = vpop.f32.mrf.mxu3  ;;  %2224 = vst [vmem:[#allocation10 + $0xa8] sm:$0xff] %v2059_v10  ;;  %v2047_v13 = vadd.f32 %v2046_v12, %v431_v2 }
 0x1ba   :  { %v2073_v11 = vadd.f32 %v2072_v63, %v433_v7 }
 0x1bb   :  { %v2088_v14 = vpop.f32.mrf.mxu0  ;;  %2255 = vst [vmem:[#allocation10 + $0x1a0] sm:$0xff] %v2047_v13 }
 0x1bc   :  { %2225 = vst [vmem:[#allocation10 + $0xb0] sm:$0xff] %v2073_v11  ;;  %v2089_v16 = vadd.f32 %v2088_v14, %v434_v3 }
 0x1be   :  { %2258 = vst [vmem:[#allocation10 + $0x1b8] sm:$0xff] %v2089_v16  ;;  %v2060_v15 = vpop.f32.mrf.mxu2 }
 0x1bf   :  { %v2061_v17 = vadd.f32 %v2060_v15, %v432_v8 }
 0x1c1   :  { %v2074_v19 = vpop.f32.mrf.mxu3  ;;  %2256 = vst [vmem:[#allocation10 + $0x1a8] sm:$0xff] %v2061_v17 }
 0x1c2   :  { %v2075_v21 = vadd.f32 %v2074_v19, %v433_v7 }
 0x1c4   :  { %2257 = vst [vmem:[#allocation10 + $0x1b0] sm:$0xff] %v2075_v21 }
 0x1d0   :  { %v2100_v18 = vpop.f32.mrf.mxu1 }
 0x1d1   :  { %v2101_v24 = vadd.f32 %v2100_v18, %v435_v23 }
 0x1d3   :  { %v2142_v25 = vpop.f32.mrf.mxu0  ;;  %2227 = vst [vmem:[#allocation10 + $0xc0] sm:$0xff] %v2101_v24 }
 0x1d4   :  { %v2143_v26 = vadd.f32 %v2142_v25, %v438_v36 }
 0x1d6   :  { %2230 = vst [vmem:[#allocation10 + $0xd8] sm:$0xff] %v2143_v26  ;;  %v2114_v29 = vpop.f32.mrf.mxu2 }
 0x1d7   :  { %v2115_v30 = vadd.f32 %v2114_v29, %v436_v27 }
 0x1d8   :  { %v2102_v33 = vpop.f32.mrf.mxu1 }
 0x1d9   :  { %v2128_v31 = vpop.f32.mrf.mxu3  ;;  %2228 = vst [vmem:[#allocation10 + $0xc8] sm:$0xff] %v2115_v30  ;;  %v2103_v34 = vadd.f32 %v2102_v33, %v435_v23 }
 0x1da   :  { %v2129_v32 = vadd.f32 %v2128_v31, %v437_v28 }
 0x1db   :  { %v2144_v35 = vpop.f32.mrf.mxu0  ;;  %2259 = vst [vmem:[#allocation10 + $0x1c0] sm:$0xff] %v2103_v34 }
 0x1dc   :  { %2229 = vst [vmem:[#allocation10 + $0xd0] sm:$0xff] %v2129_v32  ;;  %v2145_v20 = vadd.f32 %v2144_v35, %v438_v36 }
 0x1de   :  { %2262 = vst [vmem:[#allocation10 + $0x1d8] sm:$0xff] %v2145_v20  ;;  %v2116_v37 = vpop.f32.mrf.mxu2 }
 0x1df   :  { %v2117_v38 = vadd.f32 %v2116_v37, %v436_v27 }
 0x1e1   :  { %v2130_v39 = vpop.f32.mrf.mxu3  ;;  %2260 = vst [vmem:[#allocation10 + $0x1c8] sm:$0xff] %v2117_v38 }
 0x1e2   :  { %v2131_v40 = vadd.f32 %v2130_v39, %v437_v28 }
 0x1e4   :  { %2261 = vst [vmem:[#allocation10 + $0x1d0] sm:$0xff] %v2131_v40 }
 0x1f0   :  { %v2156_v43 = vpop.f32.mrf.mxu1 }
 0x1f1   :  { %v2157_v55 = vadd.f32 %v2156_v43, %v439_v41  ;;  %v2198_v44 = vpop.f32.mrf.mxu0 }
 0x1f2   :  { %v2199_v45 = vadd.f32 %v2198_v44, %v442_v42 }
 0x1f3   :  { %2231 = vst [vmem:[#allocation10 + $0xe0] sm:$0xff] %v2157_v55 }
 0x1f4   :  { %2234 = vst [vmem:[#allocation10 + $0xf8] sm:$0xff] %v2199_v45 }
 0x1f6   :  { %v2170_v49 = vpop.f32.mrf.mxu2 }
 0x1f7   :  { %v2171_v50 = vadd.f32 %v2170_v49, %v440_v46  ;;  %v2184_v51 = vpop.f32.mrf.mxu3 }
 0x1f8   :  { %v2185_v52 = vadd.f32 %v2184_v51, %v441_v48  ;;  %v2158_v54 = vpop.f32.mrf.mxu1 }
 0x1f9   :  { %2232 = vst [vmem:[#allocation10 + $0xe8] sm:$0xff] %v2171_v50  ;;  %v2159_v47 = vadd.f32 %v2158_v54, %v439_v41  ;;  %v2200_v56 = vpop.f32.mrf.mxu0 }
 0x1fa   :  { %2233 = vst [vmem:[#allocation10 + $0xf0] sm:$0xff] %v2185_v52  ;;  %v2201_v57 = vadd.f32 %v2200_v56, %v442_v42 }
 0x1fb   :  { %2263 = vst [vmem:[#allocation10 + $0x1e0] sm:$0xff] %v2159_v47 }
 0x1fc   :  { %2266 = vst [vmem:[#allocation10 + $0x1f8] sm:$0xff] %v2201_v57 }
 0x1fe   :  { %v2172_v58 = vpop.f32.mrf.mxu2 }
 0x1ff   :  { %v2173_v53 = vadd.f32 %v2172_v58, %v440_v46  ;;  %v2186_v59 = vpop.f32.mrf.mxu3 }
 0x200   :  { %v2187_v60 = vadd.f32 %v2186_v59, %v441_v48 }
 0x201   :  { %2264 = vst [vmem:[#allocation10 + $0x1e8] sm:$0xff] %v2173_v53 }
 0x202   :  { %2265 = vst [vmem:[#allocation10 + $0x1f0] sm:$0xff] %v2187_v60 }
 0x203   :  { %2279 = dma.vmem_to_hbm [thread:$0]  %s2272_s15, 8192, %s2274_s18, [#allocation4], %s3743_s19, %s3743_s19, %s3744_s20  }
 0x204   :  { %3732 = dma.done.wait [#allocation4], 8192  }
 0x205   :  { %3733 = vsyncadd [#allocation4], 4294959104 }
 0x206   :  { %2284 = vsyncpa [#allocation3], 1 }
 0x207   :  { %2285 = vsyncpa [#allocation6], 1 }
 0x208   :  { %2286 = vsyncpa [#allocation9], 1 }
 0x209   :  { %2287 = vsyncpa [#allocation4], 1 }

</bundles_post_ra>
